<compile_context>
chip_gen: v6e
topology: v6e:2x2x1
jax: 0.10.0
libtpu: 0.0.40
codegen_flags: <defaults>
</compile_context>

<pallas_src>
import functools

import jax
import jax.numpy as jnp
from jax.experimental import pallas as pl
from jax.experimental.pallas import tpu as pltpu

HIDDEN = 64
NUM_CLASSES = 4
INPUT_CHANNELS = 35
C1 = 32                      # conv1 output channels
C2 = 64                      # conv2 output channels

K1 = 48                      # conv1 contraction dim (35 channels zero-padded)
H2 = 2 * HIDDEN              # combined [layer0 | layer1] state width
G8 = 8 * HIDDEN              # combined gate width (i|f|o|g, each 2H wide)

# Row offsets inside the packed bf16 weight slab (all multiples of 16 so bf16
# sublane tiles stay aligned): conv1, conv2, W_ih0(wide), W_block, W_fc.
_W1_R, _W2_R, _WWIDE_R, _WBLK_R, _WFC_R, _WSLAB_ROWS = 0, 48, 80, 144, 272, 336


def _convlstm_kernel(x_ref, w_ref, b_ref, out_ref, xp_ref, *, nb, nt):
    H = HIDDEN

    def conv_pool(act, w_bf16, bias_row, cout):
        """Conv2d(k=(2,2), pad=(1,1)) + bias + ReLU + MaxPool2d((2,2), stride 1)
        on time-major stacked activations act: (T*B, Cin), width-1 input.
        ONE fused matmul + shifted-row adds (shift = B rows) + VPU maxes."""
        n = jnp.dot(act.astype(jnp.bfloat16), w_bf16,
                    preferred_element_type=jnp.float32)        # (T*B, 4*cout)
        n0, n1 = n[:, :2 * cout], n[:, 2 * cout:]
        z = jnp.zeros((nb, 2 * cout), jnp.float32)
        # conv row r: kh=0 taps hit data row r-1, kh=1 taps hit data row r
        a = (jnp.concatenate([z, n0], axis=0) +
             jnp.concatenate([n1, z], axis=0) + bias_row)      # ((T+1)*B, 2C)
        a = jnp.maximum(a, 0.0)                                # ReLU
        cm = jnp.maximum(a[:, :cout], a[:, cout:])             # max over width
        return jnp.maximum(cm[:nt * nb, :], cm[nb:, :])        # max over rows

    # conv1 -> pool -> conv2 -> pool (all batches in one matmul per layer).
    p1 = conv_pool(x_ref[...], w_ref[_W1_R:_W2_R, 0:4 * C1],
                   b_ref[0:1, 0:2 * C1], C1)                   # (T*B, 32)
    feat = conv_pool(p1, w_ref[_W2_R:_WWIDE_R, 0:4 * C2],
                     b_ref[1:2, 0:2 * C2], C2)                 # (T*B, 64)

    # Hoisted LSTM layer-0 input projection, produced directly in the combined
    # gate layout [i0 i1 f0 f1 o0 o1 g0 g1]; layer-1 slots carry the constant
    # layer-1 bias.  Stored to VMEM so it does not pin vregs across the loop.
    xp_ref[...] = jnp.dot(feat.astype(jnp.bfloat16), w_ref[_WWIDE_R:_WBLK_R, :],
                          preferred_element_type=jnp.float32) + b_ref[2:3, :]

    # Skewed 2-layer LSTM: macro-step k updates layer 0 at time k and layer 1
    # at time k-1 with a single (B,2H)x(2H,8H) block matmul.
    lane = jax.lax.broadcasted_iota(jnp.int32, (nb, H2), 1)
    layer0_mask = (lane < H).astype(jnp.float32)
    uc = jnp.zeros((nb, H2), jnp.float32)        # [h1_{k-1} | h2_{k-2}]
    cc = jnp.zeros((nb, H2), jnp.float32)        # [c1_{k-1} | c2_{k-2}]

    for k in range(nt + 1):                      # static, fully unrolled
        if k == 0:
            g = xp_ref[0:nb, :]                  # state is zero: no matmul
        else:
            add = xp_ref[k * nb:(k + 1) * nb, :] if k < nt else b_ref[2:3, :]
            # Block weight read from VMEM inside the loop so the scheduler may
            # reload it instead of pinning ~32 vregs across the unrolled loop.
            g = jnp.dot(uc.astype(jnp.bfloat16), w_ref[_WBLK_R:_WFC_R, :],
                        preferred_element_type=jnp.float32) + add
        s = jax.nn.sigmoid(g[:, :3 * H2])        # i | f | o : one contiguous span
        gi, gf, go = s[:, :H2], s[:, H2:2 * H2], s[:, 2 * H2:]
        gc = jnp.tanh(g[:, 3 * H2:])             # cell candidate
        cc = gf * cc + gi * gc
        uc = go * jnp.tanh(cc)
        if k == 0:
            # layer-1 "time -1" does not exist: keep its halves at zero.
            cc = cc * layer0_mask
            uc = uc * layer0_mask

    # FC on h_n[-1] = h2_{T-1} (layer-1 half of the combined state).
    logits = jnp.dot(uc[:, H:].astype(jnp.bfloat16),
                     w_ref[_WFC_R:_WSLAB_ROWS, 0:128],
                     preferred_element_type=jnp.float32)       # (B, 128)
    out_ref[...] = logits[:, :NUM_CLASSES] + b_ref[3:4, 0:NUM_CLASSES]


# ------------------------------ host-side prep ------------------------------

def _wide_gates(w_t, layer):
    """Place PyTorch gate column blocks [i|f|g|o] of w_t (in_dim, 4H) into the
    combined-gate layout [i0 i1 f0 f1 o0 o1 g0 g1] (in_dim, 8H); zeros elsewhere."""
    H = HIDDEN
    out = jnp.zeros((w_t.shape[0], G8), jnp.float32)
    for slot, p in enumerate((0, 1, 3, 2)):           # wide order: i, f, o, g
        out = out.at[:, slot * 2 * H + layer * H:
                        slot * 2 * H + (layer + 1) * H].set(
            w_t[:, p * H:(p + 1) * H])
    return out


def _conv_fused(w):
    """(Cout, Cin, 2, 2) -> (Cin, 4*Cout): [kh0:(kw1|kw0) | kh1:(kw1|kw0)]."""
    k0 = jnp.concatenate([w[:, :, 0, 1].T, w[:, :, 0, 0].T], axis=1)
    k1 = jnp.concatenate([w[:, :, 1, 1].T, w[:, :, 1, 0].T], axis=1)
    return jnp.concatenate([k0, k1], axis=1)


def conv_lstm_forward(x_nchw, params):
    """x_nchw: torch-style NCHW (B, 35, T, W) with W == 1 (see header note)."""
    B, _, T, W = x_nchw.shape
    assert W == 1, "reference forward implies C*W == 64, i.e. W must be 1"
    H = HIDDEN

    # NCHW -> TIME-MAJOR (T*B, Cin) stack, channel lanes zero-padded to K1.
    x_tm = jnp.transpose(x_nchw[:, :, :, 0], (2, 0, 1)).reshape(T * B,
                                                                INPUT_CHANNELS)
    x_tm = jnp.pad(x_tm.astype(jnp.float32), ((0, 0), (0, K1 - INPUT_CHANNELS)))

    # ---- one bf16 weight slab (single DMA descriptor) ----
    wslab = jnp.zeros((_WSLAB_ROWS, G8), jnp.float32)
    wslab = wslab.at[_W1_R:_W1_R + INPUT_CHANNELS, 0:4 * C1].set(
        _conv_fused(params['w_conv1']))
    wslab = wslab.at[_W2_R:_W2_R + C1, 0:4 * C2].set(_conv_fused(params['w_conv2']))
    wslab = wslab.at[_WWIDE_R:_WWIDE_R + C2, :].set(_wide_gates(params['w_ih0'].T, 0))
    blk_top = _wide_gates(params['w_hh0'].T, 0) + _wide_gates(params['w_ih1'].T, 1)
    blk_bot = _wide_gates(params['w_hh1'].T, 1)
    wslab = wslab.at[_WBLK_R:_WBLK_R + H, :].set(blk_top)
    wslab = wslab.at[_WBLK_R + H:_WFC_R, :].set(blk_bot)
    wslab = wslab.at[_WFC_R:_WFC_R + H, 0:NUM_CLASSES].set(params['w_fc'].T)
    wslab = wslab.astype(jnp.bfloat16)

    # ---- one f32 bias slab ----
    bl_wide = (_wide_gates((params['b_ih0'] + params['b_hh0']).reshape(1, 4 * H), 0) +
               _wide_gates((params['b_ih1'] + params['b_hh1']).reshape(1, 4 * H), 1))
    bslab = jnp.zeros((8, G8), jnp.float32)
    bslab = bslab.at[0, 0:2 * C1].set(jnp.concatenate([params['b_conv1']] * 2))
    bslab = bslab.at[1, 0:2 * C2].set(jnp.concatenate([params['b_conv2']] * 2))
    bslab = bslab.at[2, :].set(bl_wide[0])
    bslab = bslab.at[3, 0:NUM_CLASSES].set(params['b_fc'])

    vmem = pl.BlockSpec(memory_space=pltpu.MemorySpace.VMEM)
    kernel = functools.partial(_convlstm_kernel, nb=B, nt=T)
    # TODO(synk): on v7x, split the batch across the 2 TensorCores; on v5e/v6e
    # the single un-gridded invocation below is the right choice.
    return pl.pallas_call(
        kernel,
        out_shape=jax.ShapeDtypeStruct((B, NUM_CLASSES), jnp.float32),
        in_specs=[vmem, vmem, vmem],
        out_specs=vmem,
        scratch_shapes=[pltpu.VMEM((T * B, G8), jnp.float32)],  # hoisted x-proj
    )(x_tm, wslab, bslab)


# --------------------------- parameter creation ------------------------------

def init_params(key):
    def u(k, shape, fan):
        bound = 1.0 / jnp.sqrt(jnp.float32(fan))
        return jax.random.uniform(k, shape, jnp.float32, -bound, bound)

    ks = jax.random.split(key, 14)
    H = HIDDEN
    p = {}
    p['w_conv1'] = u(ks[0], (C1, INPUT_CHANNELS, 2, 2), INPUT_CHANNELS * 4)
    p['b_conv1'] = u(ks[1], (C1,), INPUT_CHANNELS * 4)
    p['w_conv2'] = u(ks[2], (C2, C1, 2, 2), C1 * 4)
    p['b_conv2'] = u(ks[3], (C2,), C1 * 4)
    p['w_ih0'] = u(ks[4], (4 * H, 64), H)
    p['w_hh0'] = u(ks[5], (4 * H, H), H)
    p['b_ih0'] = u(ks[6], (4 * H,), H)
    p['b_hh0'] = u(ks[7], (4 * H,), H)
    p['w_ih1'] = u(ks[8], (4 * H, H), H)
    p['w_hh1'] = u(ks[9], (4 * H, H), H)
    p['b_ih1'] = u(ks[10], (4 * H,), H)
    p['b_hh1'] = u(ks[11], (4 * H,), H)
    p['w_fc'] = u(ks[12], (NUM_CLASSES, H), H)
    p['b_fc'] = u(ks[13], (NUM_CLASSES,), H)
    return p


if __name__ == "__main__":
    key = jax.random.PRNGKey(0)
    pkey, xkey = jax.random.split(key)
    params = init_params(pkey)
    # x: NCHW = (batch=2, channels=35, H=8 time steps, W=1).  W must be 1 so the
    # flattened per-step feature dim equals the LSTM input_size of 64.
    x = jax.random.normal(xkey, (2, INPUT_CHANNELS, 8, 1), jnp.float32)
    out = jax.jit(conv_lstm_forward)(x, params)
    out = jax.block_until_ready(out)
    assert out.shape == (2, NUM_CLASSES)
    print("KERNEL_OK")
</pallas_src>

<mosaic_0001>
module attributes {stable_mosaic.version = 11 : i64} {
  func.func @_convlstm_kernel(%arg0: memref<16x48xf32, #tpu.memory_space<vmem>>, %arg1: memref<336x512xbf16, #tpu.memory_space<vmem>>, %arg2: memref<8x512xf32, #tpu.memory_space<vmem>>, %arg3: memref<2x4xf32, #tpu.memory_space<vmem>>, %arg4: memref<16x512xf32, #tpu.memory_space<vmem>>) attributes {dimension_semantics = [], scalar_prefetch = 0 : i64, scratch_operands = 1 : i64, tpu.core_type = #tpu.core_type<tc>} {
    %c0 = arith.constant 0 : index
    %c0_0 = arith.constant 0 : index
    %0 = vector.load %arg0[%c0, %c0_0] : memref<16x48xf32, #tpu.memory_space<vmem>>, vector<16x48xf32>
    %c0_1 = arith.constant 0 : index
    %c0_2 = arith.constant 0 : index
    %1 = vector.load %arg1[%c0_1, %c0_2] : memref<336x512xbf16, #tpu.memory_space<vmem>>, vector<48x128xbf16>
    %c0_3 = arith.constant 0 : index
    %c0_4 = arith.constant 0 : index
    %2 = vector.load %arg2[%c0_3, %c0_4] : memref<8x512xf32, #tpu.memory_space<vmem>>, vector<1x64xf32>
    %3 = arith.truncf %0 : vector<16x48xf32> to vector<16x48xbf16>
    %cst = arith.constant dense<0.000000e+00> : vector<16x128xf32>
    %4 = tpu.matmul %3, %1, %cst {dimension_numbers = #tpu.dot_dimension_numbers<[1], [0], [0], [1], [0, 0, 1, 1], [], []>} : vector<16x48xbf16>, vector<48x128xbf16>, vector<16x128xf32> -> vector<16x128xf32>
    %5 = vector.extract_strided_slice %4 {offsets = [0, 0], sizes = [16, 64], strides = [1, 1]} : vector<16x128xf32> to vector<16x64xf32>
    %6 = vector.extract_strided_slice %4 {offsets = [0, 64], sizes = [16, 64], strides = [1, 1]} : vector<16x128xf32> to vector<16x64xf32>
    %cst_5 = arith.constant 0.000000e+00 : f32
    %7 = vector.broadcast %cst_5 : f32 to vector<2x64xf32>
    %8 = tpu.concatenate %7, %5 in 0 : vector<2x64xf32>, vector<16x64xf32> -> vector<18x64xf32>
    %9 = tpu.concatenate %6, %7 in 0 : vector<16x64xf32>, vector<2x64xf32> -> vector<18x64xf32>
    %10 = arith.addf %8, %9 : vector<18x64xf32>
    %11 = vector.broadcast %2 : vector<1x64xf32> to vector<18x64xf32>
    %12 = arith.addf %10, %11 : vector<18x64xf32>
    %cst_6 = arith.constant 0.000000e+00 : f32
    %13 = vector.broadcast %cst_6 : f32 to vector<18x64xf32>
    %14 = arith.maximumf %12, %13 : vector<18x64xf32>
    %15 = vector.extract_strided_slice %14 {offsets = [0, 0], sizes = [18, 32], strides = [1, 1]} : vector<18x64xf32> to vector<18x32xf32>
    %16 = vector.extract_strided_slice %14 {offsets = [0, 32], sizes = [18, 32], strides = [1, 1]} : vector<18x64xf32> to vector<18x32xf32>
    %17 = arith.maximumf %15, %16 : vector<18x32xf32>
    %18 = vector.extract_strided_slice %17 {offsets = [0, 0], sizes = [16, 32], strides = [1, 1]} : vector<18x32xf32> to vector<16x32xf32>
    %19 = vector.extract_strided_slice %17 {offsets = [2, 0], sizes = [16, 32], strides = [1, 1]} : vector<18x32xf32> to vector<16x32xf32>
    %20 = arith.maximumf %18, %19 : vector<16x32xf32>
    %c48 = arith.constant 48 : index
    %c0_7 = arith.constant 0 : index
    %21 = vector.load %arg1[%c48, %c0_7] : memref<336x512xbf16, #tpu.memory_space<vmem>>, vector<32x256xbf16>
    %c1 = arith.constant 1 : index
    %c0_8 = arith.constant 0 : index
    %22 = vector.load %arg2[%c1, %c0_8] : memref<8x512xf32, #tpu.memory_space<vmem>>, vector<1x128xf32>
    %23 = arith.truncf %20 : vector<16x32xf32> to vector<16x32xbf16>
    %cst_9 = arith.constant dense<0.000000e+00> : vector<16x256xf32>
    %24 = tpu.matmul %23, %21, %cst_9 {dimension_numbers = #tpu.dot_dimension_numbers<[1], [0], [0], [1], [0, 0, 1, 1], [], []>} : vector<16x32xbf16>, vector<32x256xbf16>, vector<16x256xf32> -> vector<16x256xf32>
    %25 = vector.extract_strided_slice %24 {offsets = [0, 0], sizes = [16, 128], strides = [1, 1]} : vector<16x256xf32> to vector<16x128xf32>
    %26 = vector.extract_strided_slice %24 {offsets = [0, 128], sizes = [16, 128], strides = [1, 1]} : vector<16x256xf32> to vector<16x128xf32>
    %cst_10 = arith.constant 0.000000e+00 : f32
    %27 = vector.broadcast %cst_10 : f32 to vector<2x128xf32>
    %28 = tpu.concatenate %27, %25 in 0 : vector<2x128xf32>, vector<16x128xf32> -> vector<18x128xf32>
    %29 = tpu.concatenate %26, %27 in 0 : vector<16x128xf32>, vector<2x128xf32> -> vector<18x128xf32>
    %30 = arith.addf %28, %29 : vector<18x128xf32>
    %31 = vector.broadcast %22 : vector<1x128xf32> to vector<18x128xf32>
    %32 = arith.addf %30, %31 : vector<18x128xf32>
    %cst_11 = arith.constant 0.000000e+00 : f32
    %33 = vector.broadcast %cst_11 : f32 to vector<18x128xf32>
    %34 = arith.maximumf %32, %33 : vector<18x128xf32>
    %35 = vector.extract_strided_slice %34 {offsets = [0, 0], sizes = [18, 64], strides = [1, 1]} : vector<18x128xf32> to vector<18x64xf32>
    %36 = vector.extract_strided_slice %34 {offsets = [0, 64], sizes = [18, 64], strides = [1, 1]} : vector<18x128xf32> to vector<18x64xf32>
    %37 = arith.maximumf %35, %36 : vector<18x64xf32>
    %38 = vector.extract_strided_slice %37 {offsets = [0, 0], sizes = [16, 64], strides = [1, 1]} : vector<18x64xf32> to vector<16x64xf32>
    %39 = vector.extract_strided_slice %37 {offsets = [2, 0], sizes = [16, 64], strides = [1, 1]} : vector<18x64xf32> to vector<16x64xf32>
    %40 = arith.maximumf %38, %39 : vector<16x64xf32>
    %41 = arith.truncf %40 : vector<16x64xf32> to vector<16x64xbf16>
    %c80 = arith.constant 80 : index
    %c0_12 = arith.constant 0 : index
    %42 = vector.load %arg1[%c80, %c0_12] : memref<336x512xbf16, #tpu.memory_space<vmem>>, vector<64x512xbf16>
    %cst_13 = arith.constant dense<0.000000e+00> : vector<16x512xf32>
    %43 = tpu.matmul %41, %42, %cst_13 {dimension_numbers = #tpu.dot_dimension_numbers<[1], [0], [0], [1], [0, 0, 1, 1], [], []>} : vector<16x64xbf16>, vector<64x512xbf16>, vector<16x512xf32> -> vector<16x512xf32>
    %c2 = arith.constant 2 : index
    %c0_14 = arith.constant 0 : index
    %44 = vector.load %arg2[%c2, %c0_14] : memref<8x512xf32, #tpu.memory_space<vmem>>, vector<1x512xf32>
    %45 = vector.broadcast %44 : vector<1x512xf32> to vector<16x512xf32>
    %46 = arith.addf %43, %45 : vector<16x512xf32>
    %c0_15 = arith.constant 0 : index
    %c0_16 = arith.constant 0 : index
    %47 = vector.load %arg4[%c0_15, %c0_16] : memref<16x512xf32, #tpu.memory_space<vmem>>, vector<16x512xf32>
    tpu.vector_store %arg4[%c0_15, %c0_16], %46 {strides = array<i32>} : memref<16x512xf32, #tpu.memory_space<vmem>>, vector<16x512xf32>,
    %48 = tpu.iota {dimensions = array<i32: 1>} : vector<2x128xi32>
    %c64_i32 = arith.constant 64 : i32
    %49 = vector.broadcast %c64_i32 : i32 to vector<2x128xi32>
    %50 = arith.cmpi slt, %48, %49 : vector<2x128xi32>
    %51 = arith.extui %50 : vector<2x128xi1> to vector<2x128xi32>
    %52 = arith.sitofp %51 : vector<2x128xi32> to vector<2x128xf32>
    %cst_17 = arith.constant 0.000000e+00 : f32
    %53 = vector.broadcast %cst_17 : f32 to vector<2x128xf32>
    %c0_18 = arith.constant 0 : index
    %c0_19 = arith.constant 0 : index
    %54 = vector.load %arg4[%c0_18, %c0_19] : memref<16x512xf32, #tpu.memory_space<vmem>>, vector<2x512xf32>
    %55 = vector.extract_strided_slice %54 {offsets = [0, 0], sizes = [2, 384], strides = [1, 1]} : vector<2x512xf32> to vector<2x384xf32>
    %56 = arith.negf %55 : vector<2x384xf32>
    %57 = math.exp %56 : vector<2x384xf32>
    %cst_20 = arith.constant 1.000000e+00 : f32
    %58 = vector.broadcast %cst_20 : f32 to vector<2x384xf32>
    %59 = arith.addf %58, %57 : vector<2x384xf32>
    %60 = arith.divf %58, %59 : vector<2x384xf32>
    %61 = vector.extract_strided_slice %60 {offsets = [0, 0], sizes = [2, 128], strides = [1, 1]} : vector<2x384xf32> to vector<2x128xf32>
    %62 = vector.extract_strided_slice %60 {offsets = [0, 128], sizes = [2, 128], strides = [1, 1]} : vector<2x384xf32> to vector<2x128xf32>
    %63 = vector.extract_strided_slice %60 {offsets = [0, 256], sizes = [2, 128], strides = [1, 1]} : vector<2x384xf32> to vector<2x128xf32>
    %64 = vector.extract_strided_slice %54 {offsets = [0, 384], sizes = [2, 128], strides = [1, 1]} : vector<2x512xf32> to vector<2x128xf32>
    %65 = math.tanh %64 : vector<2x128xf32>
    %66 = arith.mulf %62, %53 : vector<2x128xf32>
    %67 = arith.mulf %61, %65 : vector<2x128xf32>
    %68 = arith.addf %66, %67 : vector<2x128xf32>
    %69 = math.tanh %68 : vector<2x128xf32>
    %70 = arith.mulf %63, %69 : vector<2x128xf32>
    %71 = arith.mulf %68, %52 : vector<2x128xf32>
    %72 = arith.mulf %70, %52 : vector<2x128xf32>
    %c2_21 = arith.constant 2 : index
    %c0_22 = arith.constant 0 : index
    %73 = vector.load %arg4[%c2_21, %c0_22] : memref<16x512xf32, #tpu.memory_space<vmem>>, vector<2x512xf32>
    %74 = arith.truncf %72 : vector<2x128xf32> to vector<2x128xbf16>
    %c144 = arith.constant 144 : index
    %c0_23 = arith.constant 0 : index
    %75 = vector.load %arg1[%c144, %c0_23] : memref<336x512xbf16, #tpu.memory_space<vmem>>, vector<128x512xbf16>
    %cst_24 = arith.constant dense<0.000000e+00> : vector<2x512xf32>
    %76 = tpu.matmul %74, %75, %cst_24 {dimension_numbers = #tpu.dot_dimension_numbers<[1], [0], [0], [1], [0, 0, 1, 1], [], []>} : vector<2x128xbf16>, vector<128x512xbf16>, vector<2x512xf32> -> vector<2x512xf32>
    %77 = arith.addf %76, %73 : vector<2x512xf32>
    %78 = vector.extract_strided_slice %77 {offsets = [0, 0], sizes = [2, 384], strides = [1, 1]} : vector<2x512xf32> to vector<2x384xf32>
    %79 = arith.negf %78 : vector<2x384xf32>
    %80 = math.exp %79 : vector<2x384xf32>
    %cst_25 = arith.constant 1.000000e+00 : f32
    %81 = vector.broadcast %cst_25 : f32 to vector<2x384xf32>
    %82 = arith.addf %81, %80 : vector<2x384xf32>
    %83 = arith.divf %81, %82 : vector<2x384xf32>
    %84 = vector.extract_strided_slice %83 {offsets = [0, 0], sizes = [2, 128], strides = [1, 1]} : vector<2x384xf32> to vector<2x128xf32>
    %85 = vector.extract_strided_slice %83 {offsets = [0, 128], sizes = [2, 128], strides = [1, 1]} : vector<2x384xf32> to vector<2x128xf32>
    %86 = vector.extract_strided_slice %83 {offsets = [0, 256], sizes = [2, 128], strides = [1, 1]} : vector<2x384xf32> to vector<2x128xf32>
    %87 = vector.extract_strided_slice %77 {offsets = [0, 384], sizes = [2, 128], strides = [1, 1]} : vector<2x512xf32> to vector<2x128xf32>
    %88 = math.tanh %87 : vector<2x128xf32>
    %89 = arith.mulf %85, %71 : vector<2x128xf32>
    %90 = arith.mulf %84, %88 : vector<2x128xf32>
    %91 = arith.addf %89, %90 : vector<2x128xf32>
    %92 = math.tanh %91 : vector<2x128xf32>
    %93 = arith.mulf %86, %92 : vector<2x128xf32>
    %c4 = arith.constant 4 : index
    %c0_26 = arith.constant 0 : index
    %94 = vector.load %arg4[%c4, %c0_26] : memref<16x512xf32, #tpu.memory_space<vmem>>, vector<2x512xf32>
    %95 = arith.truncf %93 : vector<2x128xf32> to vector<2x128xbf16>
    %c144_27 = arith.constant 144 : index
    %c0_28 = arith.constant 0 : index
    %96 = vector.load %arg1[%c144_27, %c0_28] : memref<336x512xbf16, #tpu.memory_space<vmem>>, vector<128x512xbf16>
    %cst_29 = arith.constant dense<0.000000e+00> : vector<2x512xf32>
    %97 = tpu.matmul %95, %96, %cst_29 {dimension_numbers = #tpu.dot_dimension_numbers<[1], [0], [0], [1], [0, 0, 1, 1], [], []>} : vector<2x128xbf16>, vector<128x512xbf16>, vector<2x512xf32> -> vector<2x512xf32>
    %98 = arith.addf %97, %94 : vector<2x512xf32>
    %99 = vector.extract_strided_slice %98 {offsets = [0, 0], sizes = [2, 384], strides = [1, 1]} : vector<2x512xf32> to vector<2x384xf32>
    %100 = arith.negf %99 : vector<2x384xf32>
    %101 = math.exp %100 : vector<2x384xf32>
    %cst_30 = arith.constant 1.000000e+00 : f32
    %102 = vector.broadcast %cst_30 : f32 to vector<2x384xf32>
    %103 = arith.addf %102, %101 : vector<2x384xf32>
    %104 = arith.divf %102, %103 : vector<2x384xf32>
    %105 = vector.extract_strided_slice %104 {offsets = [0, 0], sizes = [2, 128], strides = [1, 1]} : vector<2x384xf32> to vector<2x128xf32>
    %106 = vector.extract_strided_slice %104 {offsets = [0, 128], sizes = [2, 128], strides = [1, 1]} : vector<2x384xf32> to vector<2x128xf32>
    %107 = vector.extract_strided_slice %104 {offsets = [0, 256], sizes = [2, 128], strides = [1, 1]} : vector<2x384xf32> to vector<2x128xf32>
    %108 = vector.extract_strided_slice %98 {offsets = [0, 384], sizes = [2, 128], strides = [1, 1]} : vector<2x512xf32> to vector<2x128xf32>
    %109 = math.tanh %108 : vector<2x128xf32>
    %110 = arith.mulf %106, %91 : vector<2x128xf32>
    %111 = arith.mulf %105, %109 : vector<2x128xf32>
    %112 = arith.addf %110, %111 : vector<2x128xf32>
    %113 = math.tanh %112 : vector<2x128xf32>
    %114 = arith.mulf %107, %113 : vector<2x128xf32>
    %c6 = arith.constant 6 : index
    %c0_31 = arith.constant 0 : index
    %115 = vector.load %arg4[%c6, %c0_31] : memref<16x512xf32, #tpu.memory_space<vmem>>, vector<2x512xf32>
    %116 = arith.truncf %114 : vector<2x128xf32> to vector<2x128xbf16>
    %c144_32 = arith.constant 144 : index
    %c0_33 = arith.constant 0 : index
    %117 = vector.load %arg1[%c144_32, %c0_33] : memref<336x512xbf16, #tpu.memory_space<vmem>>, vector<128x512xbf16>
    %cst_34 = arith.constant dense<0.000000e+00> : vector<2x512xf32>
    %118 = tpu.matmul %116, %117, %cst_34 {dimension_numbers = #tpu.dot_dimension_numbers<[1], [0], [0], [1], [0, 0, 1, 1], [], []>} : vector<2x128xbf16>, vector<128x512xbf16>, vector<2x512xf32> -> vector<2x512xf32>
    %119 = arith.addf %118, %115 : vector<2x512xf32>
    %120 = vector.extract_strided_slice %119 {offsets = [0, 0], sizes = [2, 384], strides = [1, 1]} : vector<2x512xf32> to vector<2x384xf32>
    %121 = arith.negf %120 : vector<2x384xf32>
    %122 = math.exp %121 : vector<2x384xf32>
    %cst_35 = arith.constant 1.000000e+00 : f32
    %123 = vector.broadcast %cst_35 : f32 to vector<2x384xf32>
    %124 = arith.addf %123, %122 : vector<2x384xf32>
    %125 = arith.divf %123, %124 : vector<2x384xf32>
    %126 = vector.extract_strided_slice %125 {offsets = [0, 0], sizes = [2, 128], strides = [1, 1]} : vector<2x384xf32> to vector<2x128xf32>
    %127 = vector.extract_strided_slice %125 {offsets = [0, 128], sizes = [2, 128], strides = [1, 1]} : vector<2x384xf32> to vector<2x128xf32>
    %128 = vector.extract_strided_slice %125 {offsets = [0, 256], sizes = [2, 128], strides = [1, 1]} : vector<2x384xf32> to vector<2x128xf32>
    %129 = vector.extract_strided_slice %119 {offsets = [0, 384], sizes = [2, 128], strides = [1, 1]} : vector<2x512xf32> to vector<2x128xf32>
    %130 = math.tanh %129 : vector<2x128xf32>
    %131 = arith.mulf %127, %112 : vector<2x128xf32>
    %132 = arith.mulf %126, %130 : vector<2x128xf32>
    %133 = arith.addf %131, %132 : vector<2x128xf32>
    %134 = math.tanh %133 : vector<2x128xf32>
    %135 = arith.mulf %128, %134 : vector<2x128xf32>
    %c8 = arith.constant 8 : index
    %c0_36 = arith.constant 0 : index
    %136 = vector.load %arg4[%c8, %c0_36] : memref<16x512xf32, #tpu.memory_space<vmem>>, vector<2x512xf32>
    %137 = arith.truncf %135 : vector<2x128xf32> to vector<2x128xbf16>
    %c144_37 = arith.constant 144 : index
    %c0_38 = arith.constant 0 : index
    %138 = vector.load %arg1[%c144_37, %c0_38] : memref<336x512xbf16, #tpu.memory_space<vmem>>, vector<128x512xbf16>
    %cst_39 = arith.constant dense<0.000000e+00> : vector<2x512xf32>
    %139 = tpu.matmul %137, %138, %cst_39 {dimension_numbers = #tpu.dot_dimension_numbers<[1], [0], [0], [1], [0, 0, 1, 1], [], []>} : vector<2x128xbf16>, vector<128x512xbf16>, vector<2x512xf32> -> vector<2x512xf32>
    %140 = arith.addf %139, %136 : vector<2x512xf32>
    %141 = vector.extract_strided_slice %140 {offsets = [0, 0], sizes = [2, 384], strides = [1, 1]} : vector<2x512xf32> to vector<2x384xf32>
    %142 = arith.negf %141 : vector<2x384xf32>
    %143 = math.exp %142 : vector<2x384xf32>
    %cst_40 = arith.constant 1.000000e+00 : f32
    %144 = vector.broadcast %cst_40 : f32 to vector<2x384xf32>
    %145 = arith.addf %144, %143 : vector<2x384xf32>
    %146 = arith.divf %144, %145 : vector<2x384xf32>
    %147 = vector.extract_strided_slice %146 {offsets = [0, 0], sizes = [2, 128], strides = [1, 1]} : vector<2x384xf32> to vector<2x128xf32>
    %148 = vector.extract_strided_slice %146 {offsets = [0, 128], sizes = [2, 128], strides = [1, 1]} : vector<2x384xf32> to vector<2x128xf32>
    %149 = vector.extract_strided_slice %146 {offsets = [0, 256], sizes = [2, 128], strides = [1, 1]} : vector<2x384xf32> to vector<2x128xf32>
    %150 = vector.extract_strided_slice %140 {offsets = [0, 384], sizes = [2, 128], strides = [1, 1]} : vector<2x512xf32> to vector<2x128xf32>
    %151 = math.tanh %150 : vector<2x128xf32>
    %152 = arith.mulf %148, %133 : vector<2x128xf32>
    %153 = arith.mulf %147, %151 : vector<2x128xf32>
    %154 = arith.addf %152, %153 : vector<2x128xf32>
    %155 = math.tanh %154 : vector<2x128xf32>
    %156 = arith.mulf %149, %155 : vector<2x128xf32>
    %c10 = arith.constant 10 : index
    %c0_41 = arith.constant 0 : index
    %157 = vector.load %arg4[%c10, %c0_41] : memref<16x512xf32, #tpu.memory_space<vmem>>, vector<2x512xf32>
    %158 = arith.truncf %156 : vector<2x128xf32> to vector<2x128xbf16>
    %c144_42 = arith.constant 144 : index
    %c0_43 = arith.constant 0 : index
    %159 = vector.load %arg1[%c144_42, %c0_43] : memref<336x512xbf16, #tpu.memory_space<vmem>>, vector<128x512xbf16>
    %cst_44 = arith.constant dense<0.000000e+00> : vector<2x512xf32>
    %160 = tpu.matmul %158, %159, %cst_44 {dimension_numbers = #tpu.dot_dimension_numbers<[1], [0], [0], [1], [0, 0, 1, 1], [], []>} : vector<2x128xbf16>, vector<128x512xbf16>, vector<2x512xf32> -> vector<2x512xf32>
    %161 = arith.addf %160, %157 : vector<2x512xf32>
    %162 = vector.extract_strided_slice %161 {offsets = [0, 0], sizes = [2, 384], strides = [1, 1]} : vector<2x512xf32> to vector<2x384xf32>
    %163 = arith.negf %162 : vector<2x384xf32>
    %164 = math.exp %163 : vector<2x384xf32>
    %cst_45 = arith.constant 1.000000e+00 : f32
    %165 = vector.broadcast %cst_45 : f32 to vector<2x384xf32>
    %166 = arith.addf %165, %164 : vector<2x384xf32>
    %167 = arith.divf %165, %166 : vector<2x384xf32>
    %168 = vector.extract_strided_slice %167 {offsets = [0, 0], sizes = [2, 128], strides = [1, 1]} : vector<2x384xf32> to vector<2x128xf32>
    %169 = vector.extract_strided_slice %167 {offsets = [0, 128], sizes = [2, 128], strides = [1, 1]} : vector<2x384xf32> to vector<2x128xf32>
    %170 = vector.extract_strided_slice %167 {offsets = [0, 256], sizes = [2, 128], strides = [1, 1]} : vector<2x384xf32> to vector<2x128xf32>
    %171 = vector.extract_strided_slice %161 {offsets = [0, 384], sizes = [2, 128], strides = [1, 1]} : vector<2x512xf32> to vector<2x128xf32>
    %172 = math.tanh %171 : vector<2x128xf32>
    %173 = arith.mulf %169, %154 : vector<2x128xf32>
    %174 = arith.mulf %168, %172 : vector<2x128xf32>
    %175 = arith.addf %173, %174 : vector<2x128xf32>
    %176 = math.tanh %175 : vector<2x128xf32>
    %177 = arith.mulf %170, %176 : vector<2x128xf32>
    %c12 = arith.constant 12 : index
    %c0_46 = arith.constant 0 : index
    %178 = vector.load %arg4[%c12, %c0_46] : memref<16x512xf32, #tpu.memory_space<vmem>>, vector<2x512xf32>
    %179 = arith.truncf %177 : vector<2x128xf32> to vector<2x128xbf16>
    %c144_47 = arith.constant 144 : index
    %c0_48 = arith.constant 0 : index
    %180 = vector.load %arg1[%c144_47, %c0_48] : memref<336x512xbf16, #tpu.memory_space<vmem>>, vector<128x512xbf16>
    %cst_49 = arith.constant dense<0.000000e+00> : vector<2x512xf32>
    %181 = tpu.matmul %179, %180, %cst_49 {dimension_numbers = #tpu.dot_dimension_numbers<[1], [0], [0], [1], [0, 0, 1, 1], [], []>} : vector<2x128xbf16>, vector<128x512xbf16>, vector<2x512xf32> -> vector<2x512xf32>
    %182 = arith.addf %181, %178 : vector<2x512xf32>
    %183 = vector.extract_strided_slice %182 {offsets = [0, 0], sizes = [2, 384], strides = [1, 1]} : vector<2x512xf32> to vector<2x384xf32>
    %184 = arith.negf %183 : vector<2x384xf32>
    %185 = math.exp %184 : vector<2x384xf32>
    %cst_50 = arith.constant 1.000000e+00 : f32
    %186 = vector.broadcast %cst_50 : f32 to vector<2x384xf32>
    %187 = arith.addf %186, %185 : vector<2x384xf32>
    %188 = arith.divf %186, %187 : vector<2x384xf32>
    %189 = vector.extract_strided_slice %188 {offsets = [0, 0], sizes = [2, 128], strides = [1, 1]} : vector<2x384xf32> to vector<2x128xf32>
    %190 = vector.extract_strided_slice %188 {offsets = [0, 128], sizes = [2, 128], strides = [1, 1]} : vector<2x384xf32> to vector<2x128xf32>
    %191 = vector.extract_strided_slice %188 {offsets = [0, 256], sizes = [2, 128], strides = [1, 1]} : vector<2x384xf32> to vector<2x128xf32>
    %192 = vector.extract_strided_slice %182 {offsets = [0, 384], sizes = [2, 128], strides = [1, 1]} : vector<2x512xf32> to vector<2x128xf32>
    %193 = math.tanh %192 : vector<2x128xf32>
    %194 = arith.mulf %190, %175 : vector<2x128xf32>
    %195 = arith.mulf %189, %193 : vector<2x128xf32>
    %196 = arith.addf %194, %195 : vector<2x128xf32>
    %197 = math.tanh %196 : vector<2x128xf32>
    %198 = arith.mulf %191, %197 : vector<2x128xf32>
    %c14 = arith.constant 14 : index
    %c0_51 = arith.constant 0 : index
    %199 = vector.load %arg4[%c14, %c0_51] : memref<16x512xf32, #tpu.memory_space<vmem>>, vector<2x512xf32>
    %200 = arith.truncf %198 : vector<2x128xf32> to vector<2x128xbf16>
    %c144_52 = arith.constant 144 : index
    %c0_53 = arith.constant 0 : index
    %201 = vector.load %arg1[%c144_52, %c0_53] : memref<336x512xbf16, #tpu.memory_space<vmem>>, vector<128x512xbf16>
    %cst_54 = arith.constant dense<0.000000e+00> : vector<2x512xf32>
    %202 = tpu.matmul %200, %201, %cst_54 {dimension_numbers = #tpu.dot_dimension_numbers<[1], [0], [0], [1], [0, 0, 1, 1], [], []>} : vector<2x128xbf16>, vector<128x512xbf16>, vector<2x512xf32> -> vector<2x512xf32>
    %203 = arith.addf %202, %199 : vector<2x512xf32>
    %204 = vector.extract_strided_slice %203 {offsets = [0, 0], sizes = [2, 384], strides = [1, 1]} : vector<2x512xf32> to vector<2x384xf32>
    %205 = arith.negf %204 : vector<2x384xf32>
    %206 = math.exp %205 : vector<2x384xf32>
    %cst_55 = arith.constant 1.000000e+00 : f32
    %207 = vector.broadcast %cst_55 : f32 to vector<2x384xf32>
    %208 = arith.addf %207, %206 : vector<2x384xf32>
    %209 = arith.divf %207, %208 : vector<2x384xf32>
    %210 = vector.extract_strided_slice %209 {offsets = [0, 0], sizes = [2, 128], strides = [1, 1]} : vector<2x384xf32> to vector<2x128xf32>
    %211 = vector.extract_strided_slice %209 {offsets = [0, 128], sizes = [2, 128], strides = [1, 1]} : vector<2x384xf32> to vector<2x128xf32>
    %212 = vector.extract_strided_slice %209 {offsets = [0, 256], sizes = [2, 128], strides = [1, 1]} : vector<2x384xf32> to vector<2x128xf32>
    %213 = vector.extract_strided_slice %203 {offsets = [0, 384], sizes = [2, 128], strides = [1, 1]} : vector<2x512xf32> to vector<2x128xf32>
    %214 = math.tanh %213 : vector<2x128xf32>
    %215 = arith.mulf %211, %196 : vector<2x128xf32>
    %216 = arith.mulf %210, %214 : vector<2x128xf32>
    %217 = arith.addf %215, %216 : vector<2x128xf32>
    %218 = math.tanh %217 : vector<2x128xf32>
    %219 = arith.mulf %212, %218 : vector<2x128xf32>
    %c2_56 = arith.constant 2 : index
    %c0_57 = arith.constant 0 : index
    %220 = vector.load %arg2[%c2_56, %c0_57] : memref<8x512xf32, #tpu.memory_space<vmem>>, vector<1x512xf32>
    %221 = arith.truncf %219 : vector<2x128xf32> to vector<2x128xbf16>
    %c144_58 = arith.constant 144 : index
    %c0_59 = arith.constant 0 : index
    %222 = vector.load %arg1[%c144_58, %c0_59] : memref<336x512xbf16, #tpu.memory_space<vmem>>, vector<128x512xbf16>
    %cst_60 = arith.constant dense<0.000000e+00> : vector<2x512xf32>
    %223 = tpu.matmul %221, %222, %cst_60 {dimension_numbers = #tpu.dot_dimension_numbers<[1], [0], [0], [1], [0, 0, 1, 1], [], []>} : vector<2x128xbf16>, vector<128x512xbf16>, vector<2x512xf32> -> vector<2x512xf32>
    %224 = vector.broadcast %220 : vector<1x512xf32> to vector<2x512xf32>
    %225 = arith.addf %223, %224 : vector<2x512xf32>
    %226 = vector.extract_strided_slice %225 {offsets = [0, 0], sizes = [2, 384], strides = [1, 1]} : vector<2x512xf32> to vector<2x384xf32>
    %227 = arith.negf %226 : vector<2x384xf32>
    %228 = math.exp %227 : vector<2x384xf32>
    %cst_61 = arith.constant 1.000000e+00 : f32
    %229 = vector.broadcast %cst_61 : f32 to vector<2x384xf32>
    %230 = arith.addf %229, %228 : vector<2x384xf32>
    %231 = arith.divf %229, %230 : vector<2x384xf32>
    %232 = vector.extract_strided_slice %231 {offsets = [0, 0], sizes = [2, 128], strides = [1, 1]} : vector<2x384xf32> to vector<2x128xf32>
    %233 = vector.extract_strided_slice %231 {offsets = [0, 128], sizes = [2, 128], strides = [1, 1]} : vector<2x384xf32> to vector<2x128xf32>
    %234 = vector.extract_strided_slice %231 {offsets = [0, 256], sizes = [2, 128], strides = [1, 1]} : vector<2x384xf32> to vector<2x128xf32>
    %235 = vector.extract_strided_slice %225 {offsets = [0, 384], sizes = [2, 128], strides = [1, 1]} : vector<2x512xf32> to vector<2x128xf32>
    %236 = math.tanh %235 : vector<2x128xf32>
    %237 = arith.mulf %233, %217 : vector<2x128xf32>
    %238 = arith.mulf %232, %236 : vector<2x128xf32>
    %239 = arith.addf %237, %238 : vector<2x128xf32>
    %240 = math.tanh %239 : vector<2x128xf32>
    %241 = arith.mulf %234, %240 : vector<2x128xf32>
    %242 = vector.extract_strided_slice %241 {offsets = [0, 64], sizes = [2, 64], strides = [1, 1]} : vector<2x128xf32> to vector<2x64xf32>
    %243 = arith.truncf %242 : vector<2x64xf32> to vector<2x64xbf16>
    %c272 = arith.constant 272 : index
    %c0_62 = arith.constant 0 : index
    %244 = vector.load %arg1[%c272, %c0_62] : memref<336x512xbf16, #tpu.memory_space<vmem>>, vector<64x128xbf16>
    %cst_63 = arith.constant dense<0.000000e+00> : vector<2x128xf32>
    %245 = tpu.matmul %243, %244, %cst_63 {dimension_numbers = #tpu.dot_dimension_numbers<[1], [0], [0], [1], [0, 0, 1, 1], [], []>} : vector<2x64xbf16>, vector<64x128xbf16>, vector<2x128xf32> -> vector<2x128xf32>
    %246 = vector.extract_strided_slice %245 {offsets = [0, 0], sizes = [2, 4], strides = [1, 1]} : vector<2x128xf32> to vector<2x4xf32>
    %c3 = arith.constant 3 : index
    %c0_64 = arith.constant 0 : index
    %247 = vector.load %arg2[%c3, %c0_64] : memref<8x512xf32, #tpu.memory_space<vmem>>, vector<1x4xf32>
    %248 = vector.broadcast %247 : vector<1x4xf32> to vector<2x4xf32>
    %249 = arith.addf %246, %248 : vector<2x4xf32>
    %c0_65 = arith.constant 0 : index
    %c0_66 = arith.constant 0 : index
    %250 = vector.load %arg3[%c0_65, %c0_66] : memref<2x4xf32, #tpu.memory_space<vmem>>, vector<2x4xf32>
    tpu.vector_store %arg3[%c0_65, %c0_66], %249 {strides = array<i32>} : memref<2x4xf32, #tpu.memory_space<vmem>>, vector<2x4xf32>,
    return
  }
}

</mosaic_0001>

<bundles_post_ra>
// kernel: conv_lstm_forward.1
= control target key start
LH: loop header
LB: loop body
LE: loop exit
PB: predicated region body
PF: predicated region fallthrough
CT: control target
= control target key end

     0   :  { %v2208_v0 = vmov 0.0   ;;  %vm2209_vm0 = vmmov 0   ;;  %s2210_s16 = smov 64   ;;  %vm44_vm1 = vcmask 392192   ;;  %s3007_s0 = inlined_call_operand.vmem [shape: f32[16,48], index: 0, kind: input, shape index: {}]   ;;  %s3008_s1 = inlined_call_operand.vmem [shape: bf16[336,512], index: 1, kind: input, shape index: {}]   ;;  %s3009_s2 = inlined_call_operand.vmem [shape: f32[8,512], index: 2, kind: input, shape index: {}]   ;;  %s3010_s3 = inlined_call_operand.hbm [shape: f32[2,4], index: 3, kind: output, shape index: {}]  }
   0x1   :  { %1887 = vmatprep.subr.bf16.mxu0 %v2208_v0  ;;  %v1925_v1 = vld [vmem:[%s3008_s1 + $0x40] ss:$16 sps:$4 sm:$0xff]   ;;  %1893 = vmatprep.mubr.msk.bf16.mxu0 %vm2209_vm0, %v2208_v0  ;;  %v17_v5 = vld [vmem:[%s3007_s0 + $0x8] sm:$0xff] }
   0x2   :  { %1888 = vmatpush3.bf16.msra.mxu0 %v1925_v1  ;;  %v1926_v2 = vld [vmem:[%s3008_s1 + $0x20] ss:$16 sps:$4 sm:$0xff]   ;;  %104 = vrot.lane.b32.xlu1 %v2208_v0, %s2210_s16 }
   0x3   :  { %1889 = vmatprep.subr.bf16.mxu0 %v2208_v0  ;;  %v1927_v3 = vld [vmem:[%s3008_s1] ss:$16 sps:$4 sm:$0xff]  }
   0x4   :  { %v16_v4 = vld [vmem:[%s3007_s0] sm:$0xff] }
   0x5   :  { %v25_v6 = vpack.c.bf16 %v17_v5, %v16_v4 }
   0x6   :  { %1890 = vmatpush3.bf16.msra.mxu0 %v1926_v2 }
   0x7   :  { %1891 = vmatprep.subr.bf16.mxu0 %v2208_v0 }
   0xa   :  { %1892 = vmatpush3.bf16.msra.mxu0 %v1927_v3 }
   0xd   :  { %1894 = vmatmul.mubr.msk.bf16.vlgmr.msra.gmra.mxu0 %vm44_vm1, %v25_v6 }
   0xe   :  { %8 = vsyncpa [#allocation4], 0  ;;  %v24_v13 = vld [vmem:[%s3009_s2] ss:$0 sm:$0xff]  ;;  %vm91_vm2 = vcmask 1041408   ;;  %s2211_s24 = smov 96  }
   0xf   :  { %v1930_v22 = vld [vmem:[%s3008_s1 + $0x84] ss:$16 sps:$4 sm:$0xff]   ;;  %v1928_v23 = vld [vmem:[%s3008_s1 + $0x80] ss:$16 sps:$4 sm:$0xff]   ;;  %v2212_v32 = vmov 0   ;;  %vm136_vm3 = vcmask 1045504  }
  0x10   :  { %188 = vmatprep.subr.bf16.mxu0 %v1930_v22  ;;  %v1933_v27 = vld [vmem:[%s3008_s1 + $0x64] ss:$16 sps:$4 sm:$0xff]   ;;  %v1931_v28 = vld [vmem:[%s3008_s1 + $0x60] ss:$16 sps:$4 sm:$0xff]   ;;  %208 = vmatprep.mubr.bf16.mxu0 %v2212_v32  ;;  %vm172_vm4 = vcmask 261120   ;;  %vm384_vm5 = vcmask 523264  }
  0x11   :  { %189 = vmatpush1.bf16.msra.mxu0 %v1928_v23  ;;  %420 = vmatprep.mubr.bf16.mxu1 %v2212_v32  ;;  %v1934_v49 = vld [vmem:[%s3008_s1 + $0x104] ss:$16 sps:$4 sm:$0xff]   ;;  %v1938_v50 = vld [vmem:[%s3008_s1 + $0x10c] ss:$16 sps:$4 sm:$0xff]   ;;  %v1936_v51 = vld [vmem:[%s3008_s1 + $0x108] ss:$16 sps:$4 sm:$0xff]  }
  0x12   :  { %190 = vmatprep.subr.bf16.mxu0 %v1933_v27  ;;  %v1939_v52 = vld [vmem:[%s3008_s1 + $0x100] ss:$16 sps:$4 sm:$0xff]   ;;  %396 = vmatprep.subr.bf16.mxu1 %v1934_v49  ;;  %v1940_v54 = vld [vmem:[%s3008_s1 + $0xe4] ss:$16 sps:$4 sm:$0xff]   ;;  %v1942_v55 = vld [vmem:[%s3008_s1 + $0xe8] ss:$16 sps:$4 sm:$0xff]  }
  0x13   :  { %397 = vmatpush1.bf16.msra.mxu1 %v1939_v52  ;;  %v1944_v56 = vld [vmem:[%s3008_s1 + $0xec] ss:$16 sps:$4 sm:$0xff]   ;;  %v1945_v58 = vld [vmem:[%s3008_s1 + $0xe0] ss:$16 sps:$4 sm:$0xff]   ;;  %v1946_v1 = vld [vmem:[%s3008_s1 + $0xc4] ss:$16 sps:$4 sm:$0xff]  }
  0x14   :  { %398 = vmatprep.subr.bf16.mxu1 %v1940_v54  ;;  %v150_v61 = vld [vmem:[%s3009_s2 + $0x1] ss:$0 sm:$0xff]  ;;  %v1950_v2 = vld [vmem:[%s3008_s1 + $0xcc] ss:$16 sps:$4 sm:$0xff]   ;;  %v1948_v4 = vld [vmem:[%s3008_s1 + $0xc8] ss:$16 sps:$4 sm:$0xff]  }
  0x15   :  { %191 = vmatpush1.bf16.msra.mxu0 %v1931_v28  ;;  %v1951_v5 = vld [vmem:[%s3008_s1 + $0xc0] ss:$16 sps:$4 sm:$0xff]   ;;  %v2419_v49 = vld [vmem:[%s3008_s1 + $0x1ac] ss:$16 sps:$4 sm:$0xff]   ;;  %v2438_v52 = vld [vmem:[%s3008_s1 + $0x184] ss:$16 sps:$4 sm:$0xff]  }
  0x16   :  { %439 = vmatprep.subr.bf16.mxu0 %v1938_v50  ;;  %v2426_v50 = vld [vmem:[%s3008_s1 + $0x1a0] ss:$16 sps:$4 sm:$0xff]   ;;  %s2213_s20 = smov [#allocation3]   ;;  %vm1768_vm7 = vcmask 25600  }
  0x17   :  { %399 = vmatpush1.bf16.msra.mxu1 %v1945_v58  ;;  %v2450_v54 = vld [vmem:[%s3008_s1 + $0x180] ss:$16 sps:$4 sm:$0xff]   ;;  %s1776_s21 = sshll.u32 %s2213_s20, 4  ;;  %s1777_s21 = int_to_ptr.vmem [resolvable:$true] %s1776_s21 }
  0x18   :  { %400 = vmatprep.subr.bf16.mxu1 %v1946_v1  ;;  %v2474_v58 = vld [vmem:[%s3008_s1 + $0x160] ss:$16 sps:$4 sm:$0xff]   ;;  %v2510_v1 = vld [vmem:[%s3008_s1 + $0x124] ss:$16 sps:$4 sm:$0xff]   ;;  %s2186_s22 = scalar_lea.vmem %s1777_s21, 32  ;;  %p2191_p1 = scmp.lt.s32.totalorder %s1777_s21, %s1777_s21 }
  0x19   :  { %p2187_p0 = scmp.ne.s32.totalorder %s1777_s21, %s2186_s22  ;;  %p2192_p2 = scmp.lt.s32.totalorder %s2186_s22, %s2186_s22 }
  0x1b   :  { %401 = vmatpush1.bf16.msra.mxu1 %v1951_v5  ;;  %v284_v5 = vlaneseq  ;;  %p2193_p3 = por %p2192_p2, %p2191_p1 }
  0x1d   :  { %p2194_p4 = pnand %p2193_p3, %p2187_p0 }
  0x74   :  { %v105_v10 = vpop.permute.xlu1 %104 }
  0xcd   :  { %v82_v7 = vpop.f32.mrf.mxu0 }
  0xce   :  { %100 = vrot.lane.b32.xlu0 %v82_v7, %s2210_s16  ;;  %v92_v11 = vrot.slane %v82_v7, 6 }
  0xcf   :  { %v1895_v8 = vpop.f32.mrf.mxu0 }
  0xd0   :  { %v98_v20 = vsel %vm91_vm2, 0.0, %v92_v11 }
  0xd1   :  { %v85_v9 = vpop.f32.mrf.mxu0 }
  0xd2   :  { %v93_v12 = vrot.slane %v85_v9, 6  ;;  %102 = vrot.lane.b32.xlu0 %v85_v9, %s2210_s16 }
  0xd3   :  { %v1896_v14 = vpop.f32.mrf.mxu0 }
  0xd4   :  { %v111_v15 = vadd.f32 %v105_v10, %v93_v12  ;;  %v94_v16 = vsel %vm91_vm2, %v92_v11, %v93_v12  ;;  %v1952_v11 = vld [vmem:[%s3008_s1 + $0xa4] ss:$16 sps:$4 sm:$0xff]   ;;  %v1956_v12 = vld [vmem:[%s3008_s1 + $0xac] ss:$16 sps:$4 sm:$0xff]   ;;  %v1954_v14 = vld [vmem:[%s3008_s1 + $0xa8] ss:$16 sps:$4 sm:$0xff]  }
  0xd5   :  { %402 = vmatprep.subr.bf16.mxu1 %v1952_v11 }
  0xd6   :  { %v114_v17 = vadd.f32 %v111_v15, %v24_v13  ;;  %v1957_v15 = vld [vmem:[%s3008_s1 + $0xa0] ss:$16 sps:$4 sm:$0xff]  }
  0xd7   :  { %403 = vmatpush1.bf16.msra.mxu1 %v1957_v15 }
  0xd8   :  { %v117_v18 = vmax.f32 %v114_v17, 0.0 }
  0xda   :  { %125 = vrot.lane.b32.xlu0 %v117_v18, %s2211_s24 }
 0x140   :  { %v101_v19 = vpop.permute.xlu0 %100 }
 0x141   :  { %v109_v21 = vadd.f32 %v101_v19, %v98_v20 }
 0x143   :  { %v112_v25 = vadd.f32 %v109_v21, %v24_v13 }
 0x144   :  { %v103_v24 = vpop.permute.xlu0 %102 }
 0x145   :  { %v110_v26 = vadd.f32 %v103_v24, %v94_v16  ;;  %v115_v30 = vmax.f32 %v112_v25, 0.0 }
 0x147   :  { %v113_v29 = vadd.f32 %v110_v26, %v24_v13 }
 0x149   :  { %v116_v31 = vmax.f32 %v113_v29, 0.0 }
 0x14b   :  { %v1915_v33 = vpack.i.bf16 %v116_v31, %v115_v30 }
 0x14c   :  { %v126_v34 = vpop.permute.xlu0 %125 }
 0x14d   :  { %1916 = vrot.lane.b32.xlu1 %v1915_v33, %s2211_s24  ;;  %v132_v36 = vmax.f32 %v117_v18, %v126_v34 }
 0x14f   :  { %v140_v41 = vrot.slane %v132_v36, 2  ;;  %v2344_v36 = vld [vmem:[%s3008_s1 + $0x204] ss:$16 sps:$4 sm:$0xff]  }
 0x150   :  { %726 = vmatprep.subr.bf16.mxu1 %v2344_v36 }
 0x1bf   :  { %v1917_v35 = vpop.permute.xlu1 %1916 }
 0x1c0   :  { %v1919_v37 = vunpack.i.h.bf16 %v1917_v35  ;;  %v1918_v38 = vunpack.i.l.bf16 %v1917_v35 }
 0x1c2   :  { %v131_v39 = vmax.f32 %v116_v31, %v1919_v37  ;;  %v130_v40 = vmax.f32 %v115_v30, %v1918_v38  ;;  %v2349_v37 = vld [vmem:[%s3008_s1 + $0x20c] ss:$16 sps:$4 sm:$0xff]   ;;  %v2354_v38 = vld [vmem:[%s3008_s1 + $0x200] ss:$16 sps:$4 sm:$0xff]  }
 0x1c4   :  { %v138_v42 = vrot.slane %v131_v39, 2  ;;  %v137_v43 = vrot.slane %v130_v40, 2 }
 0x1c6   :  { %v141_v44 = vsel %vm136_vm3, %v138_v42, %v140_v41  ;;  %v139_v45 = vsel %vm136_vm3, %v137_v43, %v138_v42  ;;  %v2369_v41 = vld [vmem:[%s3008_s1 + $0x1ec] ss:$16 sps:$4 sm:$0xff]   ;;  %v2378_v42 = vld [vmem:[%s3008_s1 + $0x1e0] ss:$16 sps:$4 sm:$0xff]   ;;  %v2383_v43 = vld [vmem:[%s3008_s1 + $0x1e8] ss:$16 sps:$4 sm:$0xff]  }
 0x1c7   :  { %v145_v46 = vmax.f32 %v131_v39, %v141_v44  ;;  %v144_v47 = vmax.f32 %v130_v40, %v139_v45  ;;  %v2359_v39 = vld [vmem:[%s3008_s1 + $0x208] ss:$16 sps:$4 sm:$0xff]   ;;  %v2364_v40 = vld [vmem:[%s3008_s1 + $0x1e4] ss:$16 sps:$4 sm:$0xff]   ;;  %v2395_v45 = vld [vmem:[%s3008_s1 + $0x1cc] ss:$16 sps:$4 sm:$0xff]  }
 0x1c8   :  { %v2390_v44 = vld [vmem:[%s3008_s1 + $0x1c4] ss:$16 sps:$4 sm:$0xff]  }
 0x1c9   :  { %v151_v48 = vpack.c.bf16 %v145_v46, %v144_v47  ;;  %v2402_v46 = vld [vmem:[%s3008_s1 + $0x1c0] ss:$16 sps:$4 sm:$0xff]   ;;  %v2407_v47 = vld [vmem:[%s3008_s1 + $0x1c8] ss:$16 sps:$4 sm:$0xff]  }
 0x1cb   :  { %1792 = vmatmul.mubr.msk.bf16.vlgmr.msra.gmra.mxu0 %vm172_vm4, %v151_v48  ;;  %v2414_v48 = vld [vmem:[%s3008_s1 + $0x1a4] ss:$16 sps:$4 sm:$0xff]  }
 0x1cc   :  { %463 = vmatprep.mubr.bf16.mxu0 %v2212_v32  ;;  %440 = vmatpush1.bf16.msra.mxu0 %v1936_v51  ;;  %v2431_v51 = vld [vmem:[%s3008_s1 + $0x1a8] ss:$16 sps:$4 sm:$0xff]  }
 0x1cd   :  { %441 = vmatprep.subr.bf16.mxu0 %v1944_v56  ;;  %v2462_v56 = vld [vmem:[%s3008_s1 + $0x164] ss:$16 sps:$4 sm:$0xff]  }
 0x1d0   :  { %442 = vmatpush1.bf16.msra.mxu0 %v1942_v55  ;;  %v2455_v55 = vld [vmem:[%s3008_s1 + $0x188] ss:$16 sps:$4 sm:$0xff]  }
 0x1d1   :  { %443 = vmatprep.subr.bf16.mxu0 %v1950_v2  ;;  %v2515_v2 = vld [vmem:[%s3008_s1 + $0x12c] ss:$16 sps:$4 sm:$0xff]  }
 0x1d4   :  { %444 = vmatpush1.bf16.msra.mxu0 %v1948_v4  ;;  %v2527_v4 = vld [vmem:[%s3008_s1 + $0x128] ss:$16 sps:$4 sm:$0xff]  }
 0x1d5   :  { %445 = vmatprep.subr.bf16.mxu0 %v1956_v12 }
 0x1d8   :  { %446 = vmatpush1.bf16.msra.mxu0 %v1954_v14 }
 0x1d9   :  { %767 = vmatprep.subr.bf16.mxu0 %v2349_v37 }
 0x28b   :  { %v210_v53 = vpop.f32.mrf.mxu0 }
 0x28c   :  { %v221_v57 = vrot.slane %v210_v53, 6  ;;  %v2443_v53 = vld [vmem:[%s3008_s1 + $0x18c] ss:$16 sps:$4 sm:$0xff]  }
 0x28d   :  { %v212_v59 = vpop.f32.mrf.mxu0 }
 0x28e   :  { %v227_v60 = vsel %vm91_vm2, 0.0, %v221_v57 }
 0x28f   :  { %v228_v62 = vadd.f32 %v227_v60, %v212_v59  ;;  %v214_v63 = vpop.f32.mrf.mxu0  ;;  %v2479_v59 = vld [vmem:[%s3008_s1 + $0x168] ss:$16 sps:$4 sm:$0xff]   ;;  %v2486_v60 = vld [vmem:[%s3008_s1 + $0x144] ss:$16 sps:$4 sm:$0xff]  }
 0x290   :  { %v222_v3 = vrot.slane %v214_v63, 6  ;;  %v2503_v63 = vld [vmem:[%s3008_s1 + $0x148] ss:$16 sps:$4 sm:$0xff]  }
 0x291   :  { %v216_v6 = vpop.f32.mrf.mxu0  ;;  %v231_v9 = vadd.f32 %v228_v62, %v150_v61  ;;  %v2498_v62 = vld [vmem:[%s3008_s1 + $0x140] ss:$16 sps:$4 sm:$0xff]  }
 0x292   :  { %v233_v7 = vadd.f32 %v222_v3, %v150_v61  ;;  %v223_v8 = vsel %vm91_vm2, %v221_v57, %v222_v3  ;;  %v2467_v57 = vld [vmem:[%s3008_s1 + $0x16c] ss:$16 sps:$4 sm:$0xff]   ;;  %v2522_v3 = vld [vmem:[%s3008_s1 + $0x120] ss:$16 sps:$4 sm:$0xff]  }
 0x293   :  { %v229_v10 = vadd.f32 %v223_v8, %v216_v6  ;;  %v234_v17 = vmax.f32 %v231_v9, 0.0  ;;  %v2535_v6 = vshrl.u32 %v284_v5, 7  ;;  %v1793_v9 = vld [vmem:[%s3009_s2 + $0x2] ss:$8 sm:$0xf] }
 0x294   :  { %v236_v13 = vmax.f32 %v233_v7, 0.0 }
 0x295   :  { %v232_v16 = vadd.f32 %v229_v10, %v150_v61  ;;  %v2491_v61 = vld [vmem:[%s3008_s1 + $0x14c] ss:$16 sps:$4 sm:$0xff]   ;;  %v286_v7 = vsub.s32 0, %v2535_v6  ;;  %v294_v8 = vsub.s32 2, %v2535_v6  ;;  %v290_v10 = vsub.s32 1, %v2535_v6 }
 0x296   :  { %244 = vrot.lane.b32.xlu0 %v236_v13, %s2210_s16  ;;  %v298_v11 = vsub.s32 3, %v2535_v6 }
 0x297   :  { %v235_v18 = vmax.f32 %v232_v16, 0.0  ;;  %v287_v12 = vrot.slane %v1793_v9, %v286_v7  ;;  %v291_v14 = vrot.slane %v1793_v9, %v290_v10 }
 0x298   :  { %v299_v15 = vrot.slane %v1793_v9, %v298_v11 }
 0x299   :  { %v1920_v19 = vpack.i.bf16 %v235_v18, %v234_v17 }
 0x29b   :  { %1921 = vrot.lane.b32.xlu1 %v1920_v19, %s2210_s16 }
 0x308   :  { %v245_v20 = vpop.permute.xlu0 %244 }
 0x309   :  { %v251_v22 = vmax.f32 %v236_v13, %v245_v20  ;;  %v295_v13 = vrot.slane %v1793_v9, %v294_v8 }
 0x30b   :  { %v258_v27 = vrot.slane %v251_v22, 2 }
 0x30d   :  { %v1922_v21 = vpop.permute.xlu1 %1921 }
 0x30e   :  { %v1924_v23 = vunpack.i.h.bf16 %v1922_v21  ;;  %v1923_v24 = vunpack.i.l.bf16 %v1922_v21 }
 0x310   :  { %v250_v25 = vmax.f32 %v235_v18, %v1924_v23  ;;  %v249_v26 = vmax.f32 %v234_v17, %v1923_v24 }
 0x312   :  { %v256_v28 = vrot.slane %v250_v25, 2  ;;  %v255_v29 = vrot.slane %v249_v26, 2 }
 0x314   :  { %v259_v30 = vsel %vm136_vm3, %v256_v28, %v258_v27  ;;  %v257_v31 = vsel %vm136_vm3, %v255_v29, %v256_v28 }
 0x315   :  { %v263_v33 = vmax.f32 %v250_v25, %v259_v30  ;;  %v262_v34 = vmax.f32 %v249_v26, %v257_v31 }
 0x317   :  { %v264_v35 = vpack.c.bf16 %v263_v33, %v262_v34 }
 0x319   :  { %1810 = vmatmul.mubr.msk.bf16.vlgmr.msra.gmra.mxu1 %vm384_vm5, %v264_v35  ;;  %1811 = vmatmul.mubr.msk.bf16.vlgmr.msra.gmra.mxu0 %vm384_vm5, %v264_v35 }
 0x31a   :  { %758 = vmatprep.mubr.bf16.mxu1 %v2212_v32  ;;  %799 = vmatprep.mubr.bf16.mxu0 %v2212_v32 }
 0x31b   :  { %727 = vmatpush1.bf16.msra.mxu1 %v2354_v38  ;;  %768 = vmatpush1.bf16.msra.mxu0 %v2359_v39 }
 0x31c   :  { %728 = vmatprep.subr.bf16.mxu1 %v2364_v40  ;;  %769 = vmatprep.subr.bf16.mxu0 %v2369_v41 }
 0x31f   :  { %729 = vmatpush1.bf16.msra.mxu1 %v2378_v42  ;;  %770 = vmatpush1.bf16.msra.mxu0 %v2383_v43 }
 0x320   :  { %730 = vmatprep.subr.bf16.mxu1 %v2390_v44  ;;  %771 = vmatprep.subr.bf16.mxu0 %v2395_v45 }
 0x323   :  { %731 = vmatpush1.bf16.msra.mxu1 %v2402_v46  ;;  %772 = vmatpush1.bf16.msra.mxu0 %v2407_v47 }
 0x324   :  { %732 = vmatprep.subr.bf16.mxu1 %v2414_v48  ;;  %773 = vmatprep.subr.bf16.mxu0 %v2419_v49 }
 0x327   :  { %733 = vmatpush1.bf16.msra.mxu1 %v2426_v50  ;;  %774 = vmatpush1.bf16.msra.mxu0 %v2431_v51 }
 0x328   :  { %734 = vmatprep.subr.bf16.mxu1 %v2438_v52  ;;  %775 = vmatprep.subr.bf16.mxu0 %v2443_v53 }
 0x32b   :  { %735 = vmatpush1.bf16.msra.mxu1 %v2450_v54  ;;  %776 = vmatpush1.bf16.msra.mxu0 %v2455_v55 }
 0x32c   :  { %736 = vmatprep.subr.bf16.mxu1 %v2462_v56  ;;  %777 = vmatprep.subr.bf16.mxu0 %v2467_v57 }
 0x32f   :  { %737 = vmatpush1.bf16.msra.mxu1 %v2474_v58  ;;  %778 = vmatpush1.bf16.msra.mxu0 %v2479_v59 }
 0x330   :  { %738 = vmatprep.subr.bf16.mxu1 %v2486_v60  ;;  %779 = vmatprep.subr.bf16.mxu0 %v2491_v61 }
 0x333   :  { %739 = vmatpush1.bf16.msra.mxu1 %v2498_v62  ;;  %780 = vmatpush1.bf16.msra.mxu0 %v2503_v63 }
 0x334   :  { %740 = vmatprep.subr.bf16.mxu1 %v2510_v1  ;;  %781 = vmatprep.subr.bf16.mxu0 %v2515_v2 }
 0x337   :  { %741 = vmatpush1.bf16.msra.mxu1 %v2522_v3  ;;  %782 = vmatpush1.bf16.msra.mxu0 %v2527_v4 }
 0x338   :  { %849 = vmatprep.subr.bf16.mxu1 %v2344_v36  ;;  %890 = vmatprep.subr.bf16.mxu0 %v2349_v37 }
 0x3d9   :  { %v422_v16 = vpop.f32.mrf.mxu1  ;;  %v465_v17 = vpop.f32.mrf.mxu0 }
 0x3da   :  { %v423_v18 = vadd.f32 %v422_v16, %v287_v12  ;;  %v466_v19 = vadd.f32 %v465_v17, %v295_v13 }
 0x3db   :  { %v424_v20 = vpop.f32.mrf.mxu1  ;;  %v467_v21 = vpop.f32.mrf.mxu0 }
 0x3dc   :  { %474 = vst [vmem:[#allocation2 + $0x30] sm:$0xff] %v423_v18  ;;  %476 = vst [vmem:[#allocation2 + $0x18] sm:$0xff] %v466_v19  ;;  %v425_v22 = vadd.f32 %v424_v20, %v291_v14  ;;  %v468_v23 = vadd.f32 %v467_v21, %v299_v15 }
 0x3dd   :  { %v426_v24 = vpop.f32.mrf.mxu1  ;;  %v469_v25 = vpop.f32.mrf.mxu0 }
 0x3de   :  { %475 = vst [vmem:[#allocation2] sm:$0xff] %v425_v22  ;;  %477 = vst [vmem:[#allocation2 + $0x10] sm:$0xff] %v468_v23  ;;  %v427_v26 = vadd.f32 %v426_v24, %v287_v12  ;;  %v470_v27 = vadd.f32 %v469_v25, %v295_v13 }
 0x3df   :  { %v428_v28 = vpop.f32.mrf.mxu1  ;;  %v471_v29 = vpop.f32.mrf.mxu0 }
 0x3e0   :  { %478 = vst [vmem:[#allocation2 + $0x8] sm:$0xff] %v427_v26  ;;  %480 = vst [vmem:[#allocation2 + $0x28] sm:$0xff] %v470_v27  ;;  %v429_v30 = vadd.f32 %v428_v28, %v291_v14  ;;  %v472_v31 = vadd.f32 %v471_v29, %v299_v15  ;;  %v483_v14 = vand.u32 127, %v284_v5 }
 0x3e2   :  { %479 = vst [vmem:[#allocation2 + $0x20] sm:$0xff] %v429_v30  ;;  %481 = vst [vmem:[#allocation2 + $0x38] sm:$0xff] %v472_v31  ;;  %vm484_vm6 = vcmp.lt.s32.totalorder %v483_v14, 64 }
 0x3e3   :  { %v487_v33 = vld [vmem:[#allocation2 + $0x30] sm:$0x3]  ;;  %v489_v16 = vld [vmem:[#allocation2 + $0x18] sm:$0x3]  ;;  %v1812_v27 = vsel %vm484_vm6, 1.0, %v2208_v0 }
 0x3e4   :  { %v1813_v34 = vmul.f32 -1.442695, %v487_v33  ;;  %v1815_v17 = vmul.f32 -1.442695, %v489_v16 }
 0x3e5   :  { %v488_v35 = vld [vmem:[#allocation2] sm:$0x3]  ;;  %v490_v19 = vld [vmem:[#allocation2 + $0x10] sm:$0x3] }
 0x3e6   :  { %2010 = vpow2.f32 %v1813_v34  ;;  %v1814_v9 = vmul.f32 -1.442695, %v488_v35  ;;  %v517_v35 = vld [vmem:[#allocation2 + $0x30] sm:$0xc] }
 0x3e7   :  { %v718_v16 = vrot.slane %v517_v35, 2 }
 0x3e8   :  { %2012 = vpow2.f32 %v1814_v9  ;;  %v518_v9 = vld [vmem:[#allocation2] sm:$0xc] }
 0x3e9   :  { %2014 = vpow2.f32 %v1815_v17 }
 0x3f3   :  { %v2011_v18 = vpop.eup %2010 }
 0x3f4   :  { %v500_v12 = vadd.f32 1.0, %v2011_v18 }
 0x3f5   :  { %v2013_v13 = vpop.eup %2012 }
 0x3f6   :  { %v501_v20 = vadd.f32 1.0, %v2013_v13  ;;  %2016 = vrcp.f32 %v500_v12  ;;  %v2015_v15 = vpop.eup %2014  ;;  %v719_v12 = vrot.slane %v518_v9, 2 }
 0x3f7   :  { %2018 = vtanh.f32 %v490_v19  ;;  %v502_v24 = vadd.f32 1.0, %v2015_v15 }
 0x3f8   :  { %2020 = vrcp.f32 %v501_v20 }
 0x3f9   :  { %2022 = vrcp.f32 %v502_v24 }
 0x403   :  { %v2017_v21 = vpop.eup %2016 }
 0x404   :  { %v2019_v22 = vpop.eup %2018 }
 0x405   :  { %v2021_v23 = vpop.eup %2020  ;;  %v511_v26 = vmul.f32 %v2019_v22, %v2017_v21 }
 0x406   :  { %v510_v25 = vmul.f32 0.0, %v2021_v23  ;;  %v2023_v30 = vpop.eup %2022 }
 0x408   :  { %v512_v28 = vadd.f32 %v511_v26, %v510_v25  ;;  %v519_v26 = vld [vmem:[#allocation2 + $0x18] sm:$0xc] }
 0x40a   :  { %2024 = vtanh.f32 %v512_v28  ;;  %v2553_v29 = vmul.f32 %v1812_v27, %v512_v28 }
 0x417   :  { %v2025_v31 = vpop.eup %2024 }
 0x418   :  { %v514_v33 = vmul.f32 %v2025_v31, %v2023_v30  ;;  %v520_v30 = vld [vmem:[#allocation2 + $0x10] sm:$0xc] }
 0x41a   :  { %v516_v34 = vmul.f32 %v1812_v27, %v514_v33  ;;  %v720_v27 = vrot.slane %v519_v26, 2  ;;  %v721_v33 = vrot.slane %v520_v30, 2 }
 0x41c   :  { %v521_v5 = vpack.c.bf16 %v516_v34, %v516_v34 }
 0x41e   :  { %759 = vmatmul.mubr.bf16.vlgmr.msra.gmra.mxu1 %v521_v5  ;;  %800 = vmatmul.mubr.bf16.vlgmr.msra.gmra.mxu0 %v521_v5 }
 0x41f   :  { %850 = vmatpush1.bf16.msra.mxu1 %v2354_v38  ;;  %891 = vmatpush1.bf16.msra.mxu0 %v2359_v39 }
 0x420   :  { %851 = vmatprep.subr.bf16.mxu1 %v2364_v40  ;;  %892 = vmatprep.subr.bf16.mxu0 %v2369_v41 }
 0x421   :  { %881 = vmatprep.mubr.bf16.mxu1 %v2212_v32  ;;  %922 = vmatprep.mubr.bf16.mxu0 %v2212_v32 }
 0x423   :  { %852 = vmatpush1.bf16.msra.mxu1 %v2378_v42  ;;  %893 = vmatpush1.bf16.msra.mxu0 %v2383_v43 }
 0x424   :  { %853 = vmatprep.subr.bf16.mxu1 %v2390_v44  ;;  %894 = vmatprep.subr.bf16.mxu0 %v2395_v45 }
 0x427   :  { %854 = vmatpush1.bf16.msra.mxu1 %v2402_v46  ;;  %895 = vmatpush1.bf16.msra.mxu0 %v2407_v47 }
 0x428   :  { %855 = vmatprep.subr.bf16.mxu1 %v2414_v48  ;;  %896 = vmatprep.subr.bf16.mxu0 %v2419_v49 }
 0x42b   :  { %856 = vmatpush1.bf16.msra.mxu1 %v2426_v50  ;;  %897 = vmatpush1.bf16.msra.mxu0 %v2431_v51 }
 0x42c   :  { %857 = vmatprep.subr.bf16.mxu1 %v2438_v52  ;;  %898 = vmatprep.subr.bf16.mxu0 %v2443_v53 }
 0x42f   :  { %858 = vmatpush1.bf16.msra.mxu1 %v2450_v54  ;;  %899 = vmatpush1.bf16.msra.mxu0 %v2455_v55 }
 0x430   :  { %859 = vmatprep.subr.bf16.mxu1 %v2462_v56  ;;  %900 = vmatprep.subr.bf16.mxu0 %v2467_v57 }
 0x433   :  { %860 = vmatpush1.bf16.msra.mxu1 %v2474_v58  ;;  %901 = vmatpush1.bf16.msra.mxu0 %v2479_v59 }
 0x434   :  { %861 = vmatprep.subr.bf16.mxu1 %v2486_v60  ;;  %902 = vmatprep.subr.bf16.mxu0 %v2491_v61 }
 0x437   :  { %862 = vmatpush1.bf16.msra.mxu1 %v2498_v62  ;;  %903 = vmatpush1.bf16.msra.mxu0 %v2503_v63 }
 0x438   :  { %863 = vmatprep.subr.bf16.mxu1 %v2510_v1  ;;  %904 = vmatprep.subr.bf16.mxu0 %v2515_v2 }
 0x43b   :  { %864 = vmatpush1.bf16.msra.mxu1 %v2522_v3  ;;  %905 = vmatpush1.bf16.msra.mxu0 %v2527_v4 }
 0x43c   :  { %972 = vmatprep.subr.bf16.mxu1 %v2344_v36  ;;  %1013 = vmatprep.subr.bf16.mxu0 %v2349_v37 }
 0x4de   :  { %v760_v17 = vpop.f32.mrf.mxu1  ;;  %v801_v18 = vpop.f32.mrf.mxu0 }
 0x4df   :  { %v761_v19 = vadd.f32 %v760_v17, %v718_v16  ;;  %v802_v28 = vadd.f32 %v801_v18, %v720_v27 }
 0x4e0   :  { %v762_v13 = vpop.f32.mrf.mxu1  ;;  %v803_v20 = vpop.f32.mrf.mxu0 }
 0x4e1   :  { %v1848_v14 = vmul.f32 -1.442695, %v761_v19  ;;  %v763_v15 = vadd.f32 %v762_v13, %v719_v12  ;;  %v1850_v31 = vmul.f32 -1.442695, %v802_v28  ;;  %v804_v5 = vadd.f32 %v803_v20, %v721_v33 }
 0x4e2   :  { %v764_v21 = vpop.f32.mrf.mxu1  ;;  %v805_v22 = vpop.f32.mrf.mxu0 }
 0x4e3   :  { %2026 = vpow2.f32 %v1848_v14  ;;  %v1849_v23 = vmul.f32 -1.442695, %v763_v15 }
 0x4e4   :  { %v765_v24 = vpop.f32.mrf.mxu1  ;;  %v806_v25 = vpop.f32.mrf.mxu0 }
 0x4e5   :  { %2028 = vpow2.f32 %v1849_v23  ;;  %v833_v25 = vld [vmem:[#allocation2] sm:$0x30] }
 0x4e6   :  { %2030 = vpow2.f32 %v1850_v31  ;;  %v842_v31 = vrot.slane %v833_v25, 4 }
 0x4f0   :  { %v2027_v34 = vpop.eup %2026 }
 0x4f1   :  { %v817_v35 = vadd.f32 1.0, %v2027_v34 }
 0x4f2   :  { %v2029_v9 = vpop.eup %2028 }
 0x4f3   :  { %2032 = vrcp.f32 %v817_v35  ;;  %v818_v16 = vadd.f32 1.0, %v2029_v9  ;;  %v2031_v17 = vpop.eup %2030 }
 0x4f4   :  { %2034 = vtanh.f32 %v804_v5  ;;  %v819_v14 = vadd.f32 1.0, %v2031_v17 }
 0x4f5   :  { %2036 = vrcp.f32 %v818_v16 }
 0x4f6   :  { %2038 = vrcp.f32 %v819_v14 }
 0x500   :  { %v2033_v19 = vpop.eup %2032 }
 0x501   :  { %v2035_v12 = vpop.eup %2034 }
 0x502   :  { %v2037_v13 = vpop.eup %2036  ;;  %v828_v18 = vmul.f32 %v2035_v12, %v2033_v19 }
 0x503   :  { %v827_v15 = vmul.f32 %v2037_v13, %v2553_v29  ;;  %v2039_v20 = vpop.eup %2038  ;;  %v832_v29 = vld [vmem:[#allocation2 + $0x30] sm:$0x30]  ;;  %v834_v13 = vld [vmem:[#allocation2 + $0x18] sm:$0x30] }
 0x504   :  { %v841_v26 = vrot.slane %v832_v29, 4  ;;  %v843_v14 = vrot.slane %v834_v13, 4 }
 0x505   :  { %v2590_v21 = vadd.f32 %v828_v18, %v827_v15  ;;  %v835_v18 = vld [vmem:[#allocation2 + $0x10] sm:$0x30] }
 0x507   :  { %2040 = vtanh.f32 %v2590_v21 }
 0x514   :  { %v2041_v22 = vpop.eup %2040 }
 0x515   :  { %v831_v23 = vmul.f32 %v2041_v22, %v2039_v20  ;;  %v844_v22 = vrot.slane %v835_v18, 4 }
 0x517   :  { %v836_v24 = vpack.c.bf16 %v831_v23, %v831_v23 }
 0x519   :  { %882 = vmatmul.mubr.bf16.vlgmr.msra.gmra.mxu1 %v836_v24  ;;  %923 = vmatmul.mubr.bf16.vlgmr.msra.gmra.mxu0 %v836_v24 }
 0x51a   :  { %973 = vmatpush1.bf16.msra.mxu1 %v2354_v38  ;;  %1014 = vmatpush1.bf16.msra.mxu0 %v2359_v39 }
 0x51b   :  { %974 = vmatprep.subr.bf16.mxu1 %v2364_v40  ;;  %1015 = vmatprep.subr.bf16.mxu0 %v2369_v41 }
 0x51c   :  { %1004 = vmatprep.mubr.bf16.mxu1 %v2212_v32  ;;  %1045 = vmatprep.mubr.bf16.mxu0 %v2212_v32 }
 0x51e   :  { %975 = vmatpush1.bf16.msra.mxu1 %v2378_v42  ;;  %1016 = vmatpush1.bf16.msra.mxu0 %v2383_v43 }
 0x51f   :  { %976 = vmatprep.subr.bf16.mxu1 %v2390_v44  ;;  %1017 = vmatprep.subr.bf16.mxu0 %v2395_v45 }
 0x522   :  { %977 = vmatpush1.bf16.msra.mxu1 %v2402_v46  ;;  %1018 = vmatpush1.bf16.msra.mxu0 %v2407_v47 }
 0x523   :  { %978 = vmatprep.subr.bf16.mxu1 %v2414_v48  ;;  %1019 = vmatprep.subr.bf16.mxu0 %v2419_v49 }
 0x526   :  { %979 = vmatpush1.bf16.msra.mxu1 %v2426_v50  ;;  %1020 = vmatpush1.bf16.msra.mxu0 %v2431_v51 }
 0x527   :  { %980 = vmatprep.subr.bf16.mxu1 %v2438_v52  ;;  %1021 = vmatprep.subr.bf16.mxu0 %v2443_v53 }
 0x52a   :  { %981 = vmatpush1.bf16.msra.mxu1 %v2450_v54  ;;  %1022 = vmatpush1.bf16.msra.mxu0 %v2455_v55 }
 0x52b   :  { %982 = vmatprep.subr.bf16.mxu1 %v2462_v56  ;;  %1023 = vmatprep.subr.bf16.mxu0 %v2467_v57 }
 0x52e   :  { %983 = vmatpush1.bf16.msra.mxu1 %v2474_v58  ;;  %1024 = vmatpush1.bf16.msra.mxu0 %v2479_v59 }
 0x52f   :  { %984 = vmatprep.subr.bf16.mxu1 %v2486_v60  ;;  %1025 = vmatprep.subr.bf16.mxu0 %v2491_v61 }
 0x532   :  { %985 = vmatpush1.bf16.msra.mxu1 %v2498_v62  ;;  %1026 = vmatpush1.bf16.msra.mxu0 %v2503_v63 }
 0x533   :  { %986 = vmatprep.subr.bf16.mxu1 %v2510_v1  ;;  %1027 = vmatprep.subr.bf16.mxu0 %v2515_v2 }
 0x536   :  { %987 = vmatpush1.bf16.msra.mxu1 %v2522_v3  ;;  %1028 = vmatpush1.bf16.msra.mxu0 %v2527_v4 }
 0x537   :  { %1083 = vmatprep.subr.bf16.mxu1 %v2344_v36  ;;  %1124 = vmatprep.subr.bf16.mxu0 %v2349_v37 }
 0x5d9   :  { %v883_v27 = vpop.f32.mrf.mxu1  ;;  %v924_v28 = vpop.f32.mrf.mxu0 }
 0x5da   :  { %v884_v30 = vadd.f32 %v883_v27, %v841_v26  ;;  %v925_v15 = vadd.f32 %v924_v28, %v843_v14 }
 0x5db   :  { %v885_v33 = vpop.f32.mrf.mxu1  ;;  %v926_v34 = vpop.f32.mrf.mxu0 }
 0x5dc   :  { %v1851_v5 = vmul.f32 -1.442695, %v884_v30  ;;  %v886_v35 = vadd.f32 %v885_v33, %v842_v31  ;;  %v1853_v20 = vmul.f32 -1.442695, %v925_v15  ;;  %v927_v24 = vadd.f32 %v926_v34, %v844_v22 }
 0x5dd   :  { %v887_v9 = vpop.f32.mrf.mxu1  ;;  %v928_v16 = vpop.f32.mrf.mxu0 }
 0x5de   :  { %2042 = vpow2.f32 %v1851_v5  ;;  %v1852_v17 = vmul.f32 -1.442695, %v886_v35 }
 0x5df   :  { %v888_v19 = vpop.f32.mrf.mxu1  ;;  %v929_v12 = vpop.f32.mrf.mxu0 }
 0x5e0   :  { %2044 = vpow2.f32 %v1852_v17  ;;  %v956_v12 = vld [vmem:[#allocation2] sm:$0xc0] }
 0x5e1   :  { %2046 = vpow2.f32 %v1853_v20  ;;  %v965_v20 = vrot.slane %v956_v12, 6 }
 0x5eb   :  { %v2043_v23 = vpop.eup %2042 }
 0x5ec   :  { %v940_v29 = vadd.f32 1.0, %v2043_v23 }
 0x5ed   :  { %v2045_v25 = vpop.eup %2044 }
 0x5ee   :  { %2048 = vrcp.f32 %v940_v29  ;;  %v941_v26 = vadd.f32 1.0, %v2045_v25  ;;  %v2047_v27 = vpop.eup %2046 }
 0x5ef   :  { %2050 = vtanh.f32 %v927_v24  ;;  %v942_v5 = vadd.f32 1.0, %v2047_v27 }
 0x5f0   :  { %2052 = vrcp.f32 %v941_v26 }
 0x5f1   :  { %2054 = vrcp.f32 %v942_v5 }
 0x5fb   :  { %v2049_v30 = vpop.eup %2048 }
 0x5fc   :  { %v2051_v31 = vpop.eup %2050 }
 0x5fd   :  { %v2053_v33 = vpop.eup %2052  ;;  %v951_v28 = vmul.f32 %v2051_v31, %v2049_v30 }
 0x5fe   :  { %v950_v35 = vmul.f32 %v2053_v33, %v2590_v21  ;;  %v2055_v34 = vpop.eup %2054  ;;  %v955_v21 = vld [vmem:[#allocation2 + $0x30] sm:$0xc0]  ;;  %v957_v33 = vld [vmem:[#allocation2 + $0x18] sm:$0xc0] }
 0x5ff   :  { %v964_v13 = vrot.slane %v955_v21, 6  ;;  %v966_v5 = vrot.slane %v957_v33, 6 }
 0x600   :  { %v2628_v9 = vadd.f32 %v951_v28, %v950_v35  ;;  %v958_v28 = vld [vmem:[#allocation2 + $0x10] sm:$0xc0] }
 0x602   :  { %2056 = vtanh.f32 %v2628_v9 }
 0x60f   :  { %v2057_v16 = vpop.eup %2056 }
 0x610   :  { %v954_v17 = vmul.f32 %v2057_v16, %v2055_v34  ;;  %v967_v16 = vrot.slane %v958_v28, 6 }
 0x612   :  { %v959_v19 = vpack.c.bf16 %v954_v17, %v954_v17 }
 0x614   :  { %1005 = vmatmul.mubr.bf16.vlgmr.msra.gmra.mxu1 %v959_v19  ;;  %1046 = vmatmul.mubr.bf16.vlgmr.msra.gmra.mxu0 %v959_v19 }
 0x615   :  { %1084 = vmatpush1.bf16.msra.mxu1 %v2354_v38  ;;  %1125 = vmatpush1.bf16.msra.mxu0 %v2359_v39 }
 0x616   :  { %1085 = vmatprep.subr.bf16.mxu1 %v2364_v40  ;;  %1126 = vmatprep.subr.bf16.mxu0 %v2369_v41 }
 0x617   :  { %1115 = vmatprep.mubr.bf16.mxu1 %v2212_v32  ;;  %1156 = vmatprep.mubr.bf16.mxu0 %v2212_v32 }
 0x619   :  { %1086 = vmatpush1.bf16.msra.mxu1 %v2378_v42  ;;  %1127 = vmatpush1.bf16.msra.mxu0 %v2383_v43 }
 0x61a   :  { %1087 = vmatprep.subr.bf16.mxu1 %v2390_v44  ;;  %1128 = vmatprep.subr.bf16.mxu0 %v2395_v45 }
 0x61d   :  { %1088 = vmatpush1.bf16.msra.mxu1 %v2402_v46  ;;  %1129 = vmatpush1.bf16.msra.mxu0 %v2407_v47 }
 0x61e   :  { %1089 = vmatprep.subr.bf16.mxu1 %v2414_v48  ;;  %1130 = vmatprep.subr.bf16.mxu0 %v2419_v49 }
 0x621   :  { %1090 = vmatpush1.bf16.msra.mxu1 %v2426_v50  ;;  %1131 = vmatpush1.bf16.msra.mxu0 %v2431_v51 }
 0x622   :  { %1091 = vmatprep.subr.bf16.mxu1 %v2438_v52  ;;  %1132 = vmatprep.subr.bf16.mxu0 %v2443_v53 }
 0x625   :  { %1092 = vmatpush1.bf16.msra.mxu1 %v2450_v54  ;;  %1133 = vmatpush1.bf16.msra.mxu0 %v2455_v55 }
 0x626   :  { %1093 = vmatprep.subr.bf16.mxu1 %v2462_v56  ;;  %1134 = vmatprep.subr.bf16.mxu0 %v2467_v57 }
 0x629   :  { %1094 = vmatpush1.bf16.msra.mxu1 %v2474_v58  ;;  %1135 = vmatpush1.bf16.msra.mxu0 %v2479_v59 }
 0x62a   :  { %1095 = vmatprep.subr.bf16.mxu1 %v2486_v60  ;;  %1136 = vmatprep.subr.bf16.mxu0 %v2491_v61 }
 0x62d   :  { %1096 = vmatpush1.bf16.msra.mxu1 %v2498_v62  ;;  %1137 = vmatpush1.bf16.msra.mxu0 %v2503_v63 }
 0x62e   :  { %1097 = vmatprep.subr.bf16.mxu1 %v2510_v1  ;;  %1138 = vmatprep.subr.bf16.mxu0 %v2515_v2 }
 0x631   :  { %1098 = vmatpush1.bf16.msra.mxu1 %v2522_v3  ;;  %1139 = vmatpush1.bf16.msra.mxu0 %v2527_v4 }
 0x632   :  { %1206 = vmatprep.subr.bf16.mxu1 %v2344_v36  ;;  %1247 = vmatprep.subr.bf16.mxu0 %v2349_v37 }
 0x6d4   :  { %v1006_v14 = vpop.f32.mrf.mxu1  ;;  %v1047_v15 = vpop.f32.mrf.mxu0 }
 0x6d5   :  { %v1007_v18 = vadd.f32 %v1006_v14, %v964_v13  ;;  %v1048_v35 = vadd.f32 %v1047_v15, %v966_v5 }
 0x6d6   :  { %v1008_v22 = vpop.f32.mrf.mxu1  ;;  %v1049_v23 = vpop.f32.mrf.mxu0 }
 0x6d7   :  { %v1854_v24 = vmul.f32 -1.442695, %v1007_v18  ;;  %v1009_v29 = vadd.f32 %v1008_v22, %v965_v20  ;;  %v1856_v34 = vmul.f32 -1.442695, %v1048_v35  ;;  %v1050_v19 = vadd.f32 %v1049_v23, %v967_v16  ;;  %v1079_v35 = vld [vmem:[#allocation2 + $0x20] sm:$0x3] }
 0x6d8   :  { %v1010_v25 = vpop.f32.mrf.mxu1  ;;  %v1051_v26 = vpop.f32.mrf.mxu0 }
 0x6d9   :  { %2058 = vpow2.f32 %v1854_v24  ;;  %v1855_v27 = vmul.f32 -1.442695, %v1009_v29 }
 0x6da   :  { %v1011_v30 = vpop.f32.mrf.mxu1  ;;  %v1052_v31 = vpop.f32.mrf.mxu0 }
 0x6db   :  { %2060 = vpow2.f32 %v1855_v27 }
 0x6dc   :  { %2062 = vpow2.f32 %v1856_v34 }
 0x6e6   :  { %v2059_v17 = vpop.eup %2058 }
 0x6e7   :  { %v1063_v21 = vadd.f32 1.0, %v2059_v17 }
 0x6e8   :  { %v2061_v12 = vpop.eup %2060 }
 0x6e9   :  { %2064 = vrcp.f32 %v1063_v21  ;;  %v1064_v13 = vadd.f32 1.0, %v2061_v12  ;;  %v2063_v14 = vpop.eup %2062 }
 0x6ea   :  { %2066 = vtanh.f32 %v1050_v19  ;;  %v1065_v24 = vadd.f32 1.0, %v2063_v14 }
 0x6eb   :  { %2068 = vrcp.f32 %v1064_v13 }
 0x6ec   :  { %2070 = vrcp.f32 %v1065_v24  ;;  %v1081_v24 = vld [vmem:[#allocation2 + $0x38] sm:$0x3] }
 0x6f6   :  { %v2065_v18 = vpop.eup %2064 }
 0x6f7   :  { %v2067_v20 = vpop.eup %2066 }
 0x6f8   :  { %v2069_v22 = vpop.eup %2068  ;;  %v1074_v15 = vmul.f32 %v2067_v20, %v2065_v18  ;;  %v1080_v18 = vld [vmem:[#allocation2 + $0x28] sm:$0x3] }
 0x6f9   :  { %v1073_v29 = vmul.f32 %v2069_v22, %v2628_v9  ;;  %v2071_v23 = vpop.eup %2070  ;;  %v1078_v9 = vld [vmem:[#allocation2 + $0x8] sm:$0x3] }
 0x6fb   :  { %v2666_v25 = vadd.f32 %v1074_v15, %v1073_v29 }
 0x6fd   :  { %2072 = vtanh.f32 %v2666_v25 }
 0x70a   :  { %v2073_v26 = vpop.eup %2072 }
 0x70b   :  { %v1077_v27 = vmul.f32 %v2073_v26, %v2071_v23 }
 0x70d   :  { %v1082_v30 = vpack.c.bf16 %v1077_v27, %v1077_v27 }
 0x70f   :  { %1116 = vmatmul.mubr.bf16.vlgmr.msra.gmra.mxu1 %v1082_v30  ;;  %1157 = vmatmul.mubr.bf16.vlgmr.msra.gmra.mxu0 %v1082_v30 }
 0x710   :  { %1207 = vmatpush1.bf16.msra.mxu1 %v2354_v38  ;;  %1248 = vmatpush1.bf16.msra.mxu0 %v2359_v39 }
 0x711   :  { %1208 = vmatprep.subr.bf16.mxu1 %v2364_v40  ;;  %1249 = vmatprep.subr.bf16.mxu0 %v2369_v41 }
 0x712   :  { %1238 = vmatprep.mubr.bf16.mxu1 %v2212_v32  ;;  %1279 = vmatprep.mubr.bf16.mxu0 %v2212_v32 }
 0x714   :  { %1209 = vmatpush1.bf16.msra.mxu1 %v2378_v42  ;;  %1250 = vmatpush1.bf16.msra.mxu0 %v2383_v43 }
 0x715   :  { %1210 = vmatprep.subr.bf16.mxu1 %v2390_v44  ;;  %1251 = vmatprep.subr.bf16.mxu0 %v2395_v45 }
 0x718   :  { %1211 = vmatpush1.bf16.msra.mxu1 %v2402_v46  ;;  %1252 = vmatpush1.bf16.msra.mxu0 %v2407_v47 }
 0x719   :  { %1212 = vmatprep.subr.bf16.mxu1 %v2414_v48  ;;  %1253 = vmatprep.subr.bf16.mxu0 %v2419_v49 }
 0x71c   :  { %1213 = vmatpush1.bf16.msra.mxu1 %v2426_v50  ;;  %1254 = vmatpush1.bf16.msra.mxu0 %v2431_v51 }
 0x71d   :  { %1214 = vmatprep.subr.bf16.mxu1 %v2438_v52  ;;  %1255 = vmatprep.subr.bf16.mxu0 %v2443_v53 }
 0x720   :  { %1215 = vmatpush1.bf16.msra.mxu1 %v2450_v54  ;;  %1256 = vmatpush1.bf16.msra.mxu0 %v2455_v55 }
 0x721   :  { %1216 = vmatprep.subr.bf16.mxu1 %v2462_v56  ;;  %1257 = vmatprep.subr.bf16.mxu0 %v2467_v57 }
 0x724   :  { %1217 = vmatpush1.bf16.msra.mxu1 %v2474_v58  ;;  %1258 = vmatpush1.bf16.msra.mxu0 %v2479_v59 }
 0x725   :  { %1218 = vmatprep.subr.bf16.mxu1 %v2486_v60  ;;  %1259 = vmatprep.subr.bf16.mxu0 %v2491_v61 }
 0x728   :  { %1219 = vmatpush1.bf16.msra.mxu1 %v2498_v62  ;;  %1260 = vmatpush1.bf16.msra.mxu0 %v2503_v63 }
 0x729   :  { %1220 = vmatprep.subr.bf16.mxu1 %v2510_v1  ;;  %1261 = vmatprep.subr.bf16.mxu0 %v2515_v2 }
 0x72c   :  { %1221 = vmatpush1.bf16.msra.mxu1 %v2522_v3  ;;  %1262 = vmatpush1.bf16.msra.mxu0 %v2527_v4 }
 0x72d   :  { %1329 = vmatprep.subr.bf16.mxu1 %v2344_v36  ;;  %1370 = vmatprep.subr.bf16.mxu0 %v2349_v37 }
 0x7cf   :  { %v1117_v31 = vpop.f32.mrf.mxu1  ;;  %v1158_v33 = vpop.f32.mrf.mxu0 }
 0x7d0   :  { %v1118_v5 = vadd.f32 %v1117_v31, %v1078_v9  ;;  %v1159_v20 = vadd.f32 %v1158_v33, %v1080_v18 }
 0x7d1   :  { %v1119_v28 = vpop.f32.mrf.mxu1  ;;  %v1160_v34 = vpop.f32.mrf.mxu0 }
 0x7d2   :  { %v1857_v16 = vmul.f32 -1.442695, %v1118_v5  ;;  %v1120_v17 = vadd.f32 %v1119_v28, %v1079_v35  ;;  %v1859_v22 = vmul.f32 -1.442695, %v1159_v20  ;;  %v1161_v15 = vadd.f32 %v1160_v34, %v1081_v24  ;;  %v2748_v24 = vld [vmem:[%s3008_s1 + $0x200] ss:$16 sps:$4 sm:$0xff]  }
 0x7d3   :  { %v1121_v19 = vpop.f32.mrf.mxu1  ;;  %v1162_v21 = vpop.f32.mrf.mxu0 }
 0x7d4   :  { %2074 = vpow2.f32 %v1857_v16  ;;  %v1858_v12 = vmul.f32 -1.442695, %v1120_v17 }
 0x7d5   :  { %v1122_v13 = vpop.f32.mrf.mxu1  ;;  %v1163_v14 = vpop.f32.mrf.mxu0 }
 0x7d6   :  { %2076 = vpow2.f32 %v1858_v12 }
 0x7d7   :  { %2078 = vpow2.f32 %v1859_v22 }
 0x7e1   :  { %v2075_v29 = vpop.eup %2074 }
 0x7e2   :  { %v1174_v23 = vadd.f32 1.0, %v2075_v29  ;;  %v2754_v29 = vld [vmem:[%s3008_s1 + $0x208] ss:$16 sps:$4 sm:$0xff]  }
 0x7e3   :  { %v2077_v26 = vpop.eup %2076 }
 0x7e4   :  { %2080 = vrcp.f32 %v1174_v23  ;;  %v1175_v27 = vadd.f32 1.0, %v2077_v26  ;;  %v2079_v30 = vpop.eup %2078  ;;  %v2766_v23 = vld [vmem:[%s3008_s1 + $0x1ec] ss:$16 sps:$4 sm:$0xff]   ;;  %v2774_v26 = vld [vmem:[%s3008_s1 + $0x1e0] ss:$16 sps:$4 sm:$0xff]  }
 0x7e5   :  { %2082 = vtanh.f32 %v1161_v15  ;;  %v1176_v35 = vadd.f32 1.0, %v2079_v30  ;;  %v2760_v15 = vld [vmem:[%s3008_s1 + $0x1e4] ss:$16 sps:$4 sm:$0xff]  }
 0x7e6   :  { %2084 = vrcp.f32 %v1175_v27  ;;  %v2780_v27 = vld [vmem:[%s3008_s1 + $0x1e8] ss:$16 sps:$4 sm:$0xff]   ;;  %v2786_v30 = vld [vmem:[%s3008_s1 + $0x1c4] ss:$16 sps:$4 sm:$0xff]  }
 0x7e7   :  { %2086 = vrcp.f32 %v1176_v35  ;;  %v2810_v35 = vld [vmem:[%s3008_s1 + $0x1a4] ss:$16 sps:$4 sm:$0xff]  }
 0x7f1   :  { %v2081_v9 = vpop.eup %2080 }
 0x7f2   :  { %v2083_v31 = vpop.eup %2082 }
 0x7f3   :  { %v2085_v5 = vpop.eup %2084  ;;  %v1185_v16 = vmul.f32 %v2083_v31, %v2081_v9  ;;  %v2792_v9 = vld [vmem:[%s3008_s1 + $0x1cc] ss:$16 sps:$4 sm:$0xff]   ;;  %v2798_v31 = vld [vmem:[%s3008_s1 + $0x1c0] ss:$16 sps:$4 sm:$0xff]  }
 0x7f4   :  { %v1184_v28 = vmul.f32 %v2085_v5, %v2666_v25  ;;  %v2087_v34 = vpop.eup %2086  ;;  %v2804_v5 = vld [vmem:[%s3008_s1 + $0x1c8] ss:$16 sps:$4 sm:$0xff]  }
 0x7f6   :  { %v2704_v33 = vadd.f32 %v1185_v16, %v1184_v28  ;;  %v2816_v28 = vld [vmem:[%s3008_s1 + $0x1ac] ss:$16 sps:$4 sm:$0xff]   ;;  %v2822_v16 = vld [vmem:[%s3008_s1 + $0x1a0] ss:$16 sps:$4 sm:$0xff]  }
 0x7f8   :  { %2088 = vtanh.f32 %v2704_v33 }
 0x805   :  { %v2089_v17 = vpop.eup %2088 }
 0x806   :  { %v1188_v19 = vmul.f32 %v2089_v17, %v2087_v34  ;;  %v2834_v34 = vld [vmem:[%s3008_s1 + $0x184] ss:$16 sps:$4 sm:$0xff]   ;;  %v2840_v17 = vld [vmem:[%s3008_s1 + $0x18c] ss:$16 sps:$4 sm:$0xff]  }
 0x808   :  { %v1193_v21 = vpack.c.bf16 %v1188_v19, %v1188_v19  ;;  %v2846_v19 = vld [vmem:[%s3008_s1 + $0x180] ss:$16 sps:$4 sm:$0xff]  }
 0x80a   :  { %1239 = vmatmul.mubr.bf16.vlgmr.msra.gmra.mxu1 %v1193_v21  ;;  %1280 = vmatmul.mubr.bf16.vlgmr.msra.gmra.mxu0 %v1193_v21  ;;  %v2852_v21 = vld [vmem:[%s3008_s1 + $0x188] ss:$16 sps:$4 sm:$0xff]  }
 0x80b   :  { %1330 = vmatpush1.bf16.msra.mxu1 %v2354_v38  ;;  %1371 = vmatpush1.bf16.msra.mxu0 %v2359_v39  ;;  %v1189_v38 = vld [vmem:[#allocation2 + $0x8] sm:$0xc]  ;;  %v1190_v39 = vld [vmem:[#allocation2 + $0x20] sm:$0xc] }
 0x80c   :  { %1331 = vmatprep.subr.bf16.mxu1 %v2364_v40  ;;  %1372 = vmatprep.subr.bf16.mxu0 %v2369_v41  ;;  %v1198_v40 = vrot.slane %v1189_v38, 2  ;;  %v2858_v38 = vld [vmem:[%s3008_s1 + $0x164] ss:$16 sps:$4 sm:$0xff]  }
 0x80d   :  { %1361 = vmatprep.mubr.bf16.mxu1 %v2212_v32  ;;  %1402 = vmatprep.mubr.bf16.mxu0 %v2212_v32 }
 0x80f   :  { %1332 = vmatpush1.bf16.msra.mxu1 %v2378_v42  ;;  %1373 = vmatpush1.bf16.msra.mxu0 %v2383_v43 }
 0x810   :  { %1333 = vmatprep.subr.bf16.mxu1 %v2390_v44  ;;  %1374 = vmatprep.subr.bf16.mxu0 %v2395_v45  ;;  %v1199_v44 = vrot.slane %v1190_v39, 2  ;;  %v2864_v39 = vld [vmem:[%s3008_s1 + $0x16c] ss:$16 sps:$4 sm:$0xff]  }
 0x813   :  { %1334 = vmatpush1.bf16.msra.mxu1 %v2402_v46  ;;  %1375 = vmatpush1.bf16.msra.mxu0 %v2407_v47 }
 0x814   :  { %1335 = vmatprep.subr.bf16.mxu1 %v2414_v48  ;;  %1376 = vmatprep.subr.bf16.mxu0 %v2419_v49 }
 0x817   :  { %1336 = vmatpush1.bf16.msra.mxu1 %v2426_v50  ;;  %1377 = vmatpush1.bf16.msra.mxu0 %v2431_v51 }
 0x818   :  { %1337 = vmatprep.subr.bf16.mxu1 %v2438_v52  ;;  %1378 = vmatprep.subr.bf16.mxu0 %v2443_v53 }
 0x81b   :  { %1338 = vmatpush1.bf16.msra.mxu1 %v2450_v54  ;;  %1379 = vmatpush1.bf16.msra.mxu0 %v2455_v55  ;;  %v1192_v55 = vld [vmem:[#allocation2 + $0x38] sm:$0xc] }
 0x81c   :  { %1339 = vmatprep.subr.bf16.mxu1 %v2462_v56  ;;  %1380 = vmatprep.subr.bf16.mxu0 %v2467_v57  ;;  %v1201_v57 = vrot.slane %v1192_v55, 2 }
 0x81f   :  { %1340 = vmatpush1.bf16.msra.mxu1 %v2474_v58  ;;  %1381 = vmatpush1.bf16.msra.mxu0 %v2479_v59 }
 0x820   :  { %1341 = vmatprep.subr.bf16.mxu1 %v2486_v60  ;;  %1382 = vmatprep.subr.bf16.mxu0 %v2491_v61 }
 0x823   :  { %1342 = vmatpush1.bf16.msra.mxu1 %v2498_v62  ;;  %1383 = vmatpush1.bf16.msra.mxu0 %v2503_v63 }
 0x824   :  { %1343 = vmatprep.subr.bf16.mxu1 %v2510_v1  ;;  %1384 = vmatprep.subr.bf16.mxu0 %v2515_v2 }
 0x827   :  { %1344 = vmatpush1.bf16.msra.mxu1 %v2522_v3  ;;  %1385 = vmatpush1.bf16.msra.mxu0 %v2527_v4 }
 0x828   :  { %1452 = vmatprep.subr.bf16.mxu1 %v2344_v36  ;;  %1493 = vmatprep.subr.bf16.mxu0 %v2349_v37  ;;  %v1191_v36 = vld [vmem:[#allocation2 + $0x28] sm:$0xc] }
 0x829   :  { %v1200_v37 = vrot.slane %v1191_v36, 2 }
 0x8ca   :  { %v1240_v41 = vpop.f32.mrf.mxu1  ;;  %v1281_v42 = vpop.f32.mrf.mxu0 }
 0x8cb   :  { %v1241_v43 = vadd.f32 %v1240_v41, %v1198_v40  ;;  %v1282_v54 = vadd.f32 %v1281_v42, %v1200_v37  ;;  %v2870_v40 = vld [vmem:[%s3008_s1 + $0x160] ss:$16 sps:$4 sm:$0xff]   ;;  %v2876_v41 = vld [vmem:[%s3008_s1 + $0x168] ss:$16 sps:$4 sm:$0xff]   ;;  %v2882_v42 = vld [vmem:[%s3008_s1 + $0x144] ss:$16 sps:$4 sm:$0xff]  }
 0x8cc   :  { %v1242_v45 = vpop.f32.mrf.mxu1  ;;  %v1283_v46 = vpop.f32.mrf.mxu0 }
 0x8cd   :  { %v1860_v47 = vmul.f32 -1.442695, %v1241_v43  ;;  %v1243_v48 = vadd.f32 %v1242_v45, %v1199_v44  ;;  %v1862_v56 = vmul.f32 -1.442695, %v1282_v54  ;;  %v1284_v59 = vadd.f32 %v1283_v46, %v1201_v57  ;;  %v2888_v43 = vld [vmem:[%s3008_s1 + $0x14c] ss:$16 sps:$4 sm:$0xff]  }
 0x8ce   :  { %v1244_v49 = vpop.f32.mrf.mxu1  ;;  %v1285_v50 = vpop.f32.mrf.mxu0  ;;  %v2894_v44 = vld [vmem:[%s3008_s1 + $0x140] ss:$16 sps:$4 sm:$0xff]   ;;  %v2900_v45 = vld [vmem:[%s3008_s1 + $0x148] ss:$16 sps:$4 sm:$0xff]   ;;  %v2906_v46 = vld [vmem:[%s3008_s1 + $0x124] ss:$16 sps:$4 sm:$0xff]  }
 0x8cf   :  { %2090 = vpow2.f32 %v1860_v47  ;;  %v1861_v51 = vmul.f32 -1.442695, %v1243_v48  ;;  %v2912_v47 = vld [vmem:[%s3008_s1 + $0x12c] ss:$16 sps:$4 sm:$0xff]   ;;  %v2918_v48 = vld [vmem:[%s3008_s1 + $0x120] ss:$16 sps:$4 sm:$0xff]  }
 0x8d0   :  { %v1245_v52 = vpop.f32.mrf.mxu1  ;;  %v1286_v53 = vpop.f32.mrf.mxu0  ;;  %v2924_v49 = vld [vmem:[%s3008_s1 + $0x128] ss:$16 sps:$4 sm:$0xff]   ;;  %v2184_v50 = vld [vmem:[%s3008_s1 + $0x204] ss:$16 sps:$4 sm:$0xff]  }
 0x8d1   :  { %2092 = vpow2.f32 %v1861_v51  ;;  %v2185_v51 = vld [vmem:[%s3008_s1 + $0x20c] ss:$16 sps:$4 sm:$0xff]   ;;  %v1313_v53 = vld [vmem:[#allocation2 + $0x20] sm:$0x30] }
 0x8d2   :  { %2094 = vpow2.f32 %v1862_v56  ;;  %v1312_v52 = vld [vmem:[#allocation2 + $0x8] sm:$0x30]  ;;  %v1322_v56 = vrot.slane %v1313_v53, 4 }
 0x8d3   :  { %v1321_v36 = vrot.slane %v1312_v52, 4 }
 0x8dc   :  { %v2091_v58 = vpop.eup %2090 }
 0x8dd   :  { %v1297_v60 = vadd.f32 1.0, %v2091_v58 }
 0x8de   :  { %v2093_v61 = vpop.eup %2092 }
 0x8df   :  { %2096 = vrcp.f32 %v1297_v60  ;;  %v1298_v62 = vadd.f32 1.0, %v2093_v61  ;;  %v2095_v63 = vpop.eup %2094 }
 0x8e0   :  { %2098 = vtanh.f32 %v1284_v59  ;;  %v1299_v4 = vadd.f32 1.0, %v2095_v63 }
 0x8e1   :  { %2100 = vrcp.f32 %v1298_v62 }
 0x8e2   :  { %2102 = vrcp.f32 %v1299_v4 }
 0x8ec   :  { %v2097_v1 = vpop.eup %2096 }
 0x8ed   :  { %v2099_v2 = vpop.eup %2098 }
 0x8ee   :  { %v2101_v3 = vpop.eup %2100  ;;  %v1308_v12 = vmul.f32 %v2099_v2, %v2097_v1 }
 0x8ef   :  { %v1307_v25 = vmul.f32 %v2101_v3, %v2704_v33  ;;  %v2103_v14 = vpop.eup %2102  ;;  %v2828_v33 = vld [vmem:[%s3008_s1 + $0x1a8] ss:$16 sps:$4 sm:$0xff]   ;;  %v1314_v3 = vld [vmem:[#allocation2 + $0x28] sm:$0x30] }
 0x8f0   :  { %v1323_v4 = vrot.slane %v1314_v3, 4 }
 0x8f1   :  { %v2742_v13 = vadd.f32 %v1308_v12, %v1307_v25  ;;  %v1315_v12 = vld [vmem:[#allocation2 + $0x38] sm:$0x30] }
 0x8f3   :  { %2104 = vtanh.f32 %v2742_v13 }
 0x900   :  { %v2105_v18 = vpop.eup %2104 }
 0x901   :  { %v1311_v20 = vmul.f32 %v2105_v18, %v2103_v14  ;;  %v1324_v18 = vrot.slane %v1315_v12, 4 }
 0x903   :  { %v1316_v22 = vpack.c.bf16 %v1311_v20, %v1311_v20 }
 0x905   :  { %1362 = vmatmul.mubr.bf16.vlgmr.msra.gmra.mxu1 %v1316_v22  ;;  %1403 = vmatmul.mubr.bf16.vlgmr.msra.gmra.mxu0 %v1316_v22 }
 0x906   :  { %1453 = vmatpush1.bf16.msra.mxu1 %v2748_v24  ;;  %1494 = vmatpush1.bf16.msra.mxu0 %v2754_v29 }
 0x907   :  { %1454 = vmatprep.subr.bf16.mxu1 %v2760_v15  ;;  %1495 = vmatprep.subr.bf16.mxu0 %v2766_v23 }
 0x908   :  { %1484 = vmatprep.mubr.bf16.mxu1 %v2212_v32  ;;  %1525 = vmatprep.mubr.bf16.mxu0 %v2212_v32 }
 0x90a   :  { %1455 = vmatpush1.bf16.msra.mxu1 %v2774_v26  ;;  %1496 = vmatpush1.bf16.msra.mxu0 %v2780_v27 }
 0x90b   :  { %1456 = vmatprep.subr.bf16.mxu1 %v2786_v30  ;;  %1497 = vmatprep.subr.bf16.mxu0 %v2792_v9 }
 0x90e   :  { %1457 = vmatpush1.bf16.msra.mxu1 %v2798_v31  ;;  %1498 = vmatpush1.bf16.msra.mxu0 %v2804_v5 }
 0x90f   :  { %1458 = vmatprep.subr.bf16.mxu1 %v2810_v35  ;;  %1499 = vmatprep.subr.bf16.mxu0 %v2816_v28 }
 0x912   :  { %1459 = vmatpush1.bf16.msra.mxu1 %v2822_v16  ;;  %1500 = vmatpush1.bf16.msra.mxu0 %v2828_v33 }
 0x913   :  { %1460 = vmatprep.subr.bf16.mxu1 %v2834_v34  ;;  %1501 = vmatprep.subr.bf16.mxu0 %v2840_v17 }
 0x916   :  { %1461 = vmatpush1.bf16.msra.mxu1 %v2846_v19  ;;  %1502 = vmatpush1.bf16.msra.mxu0 %v2852_v21 }
 0x917   :  { %1462 = vmatprep.subr.bf16.mxu1 %v2858_v38  ;;  %1503 = vmatprep.subr.bf16.mxu0 %v2864_v39 }
 0x91a   :  { %1463 = vmatpush1.bf16.msra.mxu1 %v2870_v40  ;;  %1504 = vmatpush1.bf16.msra.mxu0 %v2876_v41 }
 0x91b   :  { %1464 = vmatprep.subr.bf16.mxu1 %v2882_v42  ;;  %1505 = vmatprep.subr.bf16.mxu0 %v2888_v43 }
 0x91e   :  { %1465 = vmatpush1.bf16.msra.mxu1 %v2894_v44  ;;  %1506 = vmatpush1.bf16.msra.mxu0 %v2900_v45 }
 0x91f   :  { %1466 = vmatprep.subr.bf16.mxu1 %v2906_v46  ;;  %1507 = vmatprep.subr.bf16.mxu0 %v2912_v47 }
 0x922   :  { %1467 = vmatpush1.bf16.msra.mxu1 %v2918_v48  ;;  %1508 = vmatpush1.bf16.msra.mxu0 %v2924_v49 }
 0x923   :  { %1581 = vmatprep.subr.bf16.mxu1 %v2184_v50  ;;  %1622 = vmatprep.subr.bf16.mxu0 %v2185_v51 }
 0x9c5   :  { %v1363_v37 = vpop.f32.mrf.mxu1  ;;  %v1404_v54 = vpop.f32.mrf.mxu0 }
 0x9c6   :  { %v1364_v55 = vadd.f32 %v1363_v37, %v1321_v36  ;;  %v1405_v25 = vadd.f32 %v1404_v54, %v1323_v4 }
 0x9c7   :  { %v1365_v57 = vpop.f32.mrf.mxu1  ;;  %v1406_v58 = vpop.f32.mrf.mxu0 }
 0x9c8   :  { %v1863_v59 = vmul.f32 -1.442695, %v1364_v55  ;;  %v1366_v60 = vadd.f32 %v1365_v57, %v1322_v56  ;;  %v1865_v14 = vmul.f32 -1.442695, %v1405_v25  ;;  %v1407_v22 = vadd.f32 %v1406_v58, %v1324_v18  ;;  %v2007_v18 = vld [vmem:[%s3008_s1 + $0x260] ss:$16 sps:$4 sm:$0xff]  }
 0x9c9   :  { %v1367_v61 = vpop.f32.mrf.mxu1  ;;  %v1408_v62 = vpop.f32.mrf.mxu0 }
 0x9ca   :  { %2106 = vpow2.f32 %v1863_v59  ;;  %v1864_v63 = vmul.f32 -1.442695, %v1366_v60 }
 0x9cb   :  { %v1368_v1 = vpop.f32.mrf.mxu1  ;;  %v1409_v2 = vpop.f32.mrf.mxu0 }
 0x9cc   :  { %2108 = vpow2.f32 %v1864_v63 }
 0x9cd   :  { %2110 = vpow2.f32 %v1865_v14  ;;  %v2006_v14 = vld [vmem:[%s3008_s1 + $0x280] ss:$16 sps:$4 sm:$0xff]  }
 0x9d7   :  { %v2107_v20 = vpop.eup %2106 }
 0x9d8   :  { %v1420_v50 = vadd.f32 1.0, %v2107_v20  ;;  %v2008_v20 = vld [vmem:[%s3008_s1 + $0x240] ss:$16 sps:$4 sm:$0xff]  }
 0x9d9   :  { %v2109_v51 = vpop.eup %2108 }
 0x9da   :  { %2112 = vrcp.f32 %v1420_v50  ;;  %v1421_v52 = vadd.f32 1.0, %v2109_v51  ;;  %v2111_v53 = vpop.eup %2110  ;;  %v1869_v50 = vld [vmem:[%s3009_s2 + $0x2] ss:$8 sm:$0xf] }
 0x9db   :  { %2114 = vtanh.f32 %v1407_v22  ;;  %v1422_v56 = vadd.f32 1.0, %v2111_v53  ;;  %v2009_v22 = vld [vmem:[%s3008_s1 + $0x220] ss:$16 sps:$4 sm:$0xff]   ;;  %v1564_v51 = vrot.slane %v1869_v50, %v286_v7  ;;  %v1572_v7 = vrot.slane %v1869_v50, %v294_v8 }
 0x9dc   :  { %2116 = vrcp.f32 %v1421_v52  ;;  %v1568_v52 = vrot.slane %v1869_v50, %v290_v10  ;;  %v1576_v10 = vrot.slane %v1869_v50, %v298_v11 }
 0x9dd   :  { %2118 = vrcp.f32 %v1422_v56 }
 0x9e7   :  { %v2113_v36 = vpop.eup %2112 }
 0x9e8   :  { %v2115_v37 = vpop.eup %2114 }
 0x9e9   :  { %v2117_v55 = vpop.eup %2116  ;;  %v1431_v54 = vmul.f32 %v2115_v37, %v2113_v36 }
 0x9ea   :  { %v1430_v57 = vmul.f32 %v2117_v55, %v2742_v13  ;;  %v2119_v58 = vpop.eup %2118  ;;  %v1436_v13 = vld [vmem:[#allocation2 + $0x20] sm:$0xc0] }
 0x9ec   :  { %v2934_v59 = vadd.f32 %v1431_v54, %v1430_v57 }
 0x9ee   :  { %2120 = vtanh.f32 %v2934_v59 }
 0x9fb   :  { %v2121_v60 = vpop.eup %2120 }
 0x9fc   :  { %v1434_v61 = vmul.f32 %v2121_v60, %v2119_v58 }
 0x9fe   :  { %v1439_v62 = vpack.c.bf16 %v1434_v61, %v1434_v61 }
 0xa00   :  { %1485 = vmatmul.mubr.bf16.vlgmr.msra.gmra.mxu1 %v1439_v62  ;;  %1526 = vmatmul.mubr.bf16.vlgmr.msra.gmra.mxu0 %v1439_v62 }
 0xa01   :  { %1582 = vmatpush1.bf16.msra.mxu1 %v2748_v24  ;;  %1623 = vmatpush1.bf16.msra.mxu0 %v2754_v29 }
 0xa02   :  { %1583 = vmatprep.subr.bf16.mxu1 %v2760_v15  ;;  %1624 = vmatprep.subr.bf16.mxu0 %v2766_v23 }
 0xa03   :  { %1613 = vmatprep.mubr.bf16.mxu1 %v2212_v32  ;;  %1654 = vmatprep.mubr.bf16.mxu0 %v2212_v32  ;;  %v1435_v32 = vld [vmem:[#allocation2 + $0x8] sm:$0xc0] }
 0xa04   :  { %v1444_v24 = vrot.slane %v1435_v32, 6 }
 0xa05   :  { %1584 = vmatpush1.bf16.msra.mxu1 %v2774_v26  ;;  %1625 = vmatpush1.bf16.msra.mxu0 %v2780_v27  ;;  %v1445_v26 = vrot.slane %v1436_v13, 6 }
 0xa06   :  { %1585 = vmatprep.subr.bf16.mxu1 %v2786_v30  ;;  %1626 = vmatprep.subr.bf16.mxu0 %v2792_v9 }
 0xa09   :  { %1586 = vmatpush1.bf16.msra.mxu1 %v2798_v31  ;;  %1627 = vmatpush1.bf16.msra.mxu0 %v2804_v5 }
 0xa0a   :  { %1587 = vmatprep.subr.bf16.mxu1 %v2810_v35  ;;  %1628 = vmatprep.subr.bf16.mxu0 %v2816_v28 }
 0xa0d   :  { %1588 = vmatpush1.bf16.msra.mxu1 %v2822_v16  ;;  %1629 = vmatpush1.bf16.msra.mxu0 %v2828_v33 }
 0xa0e   :  { %1589 = vmatprep.subr.bf16.mxu1 %v2834_v34  ;;  %1630 = vmatprep.subr.bf16.mxu0 %v2840_v17  ;;  %v1437_v34 = vld [vmem:[#allocation2 + $0x28] sm:$0xc0] }
 0xa0f   :  { %v1446_v17 = vrot.slane %v1437_v34, 6  ;;  %v1766_v34 = vld [vmem:[%s3009_s2 + $0x3] ss:$0 sm:$0xff] }
 0xa11   :  { %1590 = vmatpush1.bf16.msra.mxu1 %v2846_v19  ;;  %1631 = vmatpush1.bf16.msra.mxu0 %v2852_v21  ;;  %v1438_v21 = vld [vmem:[#allocation2 + $0x38] sm:$0xc0] }
 0xa12   :  { %1591 = vmatprep.subr.bf16.mxu1 %v2858_v38  ;;  %1632 = vmatprep.subr.bf16.mxu0 %v2864_v39  ;;  %v1447_v39 = vrot.slane %v1438_v21, 6 }
 0xa15   :  { %1592 = vmatpush1.bf16.msra.mxu1 %v2870_v40  ;;  %1633 = vmatpush1.bf16.msra.mxu0 %v2876_v41 }
 0xa16   :  { %1593 = vmatprep.subr.bf16.mxu1 %v2882_v42  ;;  %1634 = vmatprep.subr.bf16.mxu0 %v2888_v43 }
 0xa19   :  { %1594 = vmatpush1.bf16.msra.mxu1 %v2894_v44  ;;  %1635 = vmatpush1.bf16.msra.mxu0 %v2900_v45 }
 0xa1a   :  { %1595 = vmatprep.subr.bf16.mxu1 %v2906_v46  ;;  %1636 = vmatprep.subr.bf16.mxu0 %v2912_v47 }
 0xa1d   :  { %1596 = vmatpush1.bf16.msra.mxu1 %v2918_v48  ;;  %1637 = vmatpush1.bf16.msra.mxu0 %v2924_v49 }
 0xa1e   :  { %1897 = vmatprep.subr.bf16.mxu1 %v2208_v0 }
 0xac0   :  { %v1486_v29 = vpop.f32.mrf.mxu1  ;;  %v1527_v15 = vpop.f32.mrf.mxu0 }
 0xac1   :  { %v1487_v23 = vadd.f32 %v1486_v29, %v1444_v24  ;;  %v1528_v19 = vadd.f32 %v1527_v15, %v1446_v17 }
 0xac2   :  { %v1488_v27 = vpop.f32.mrf.mxu1  ;;  %v1529_v30 = vpop.f32.mrf.mxu0 }
 0xac3   :  { %v1866_v9 = vmul.f32 -1.442695, %v1487_v23  ;;  %v1489_v31 = vadd.f32 %v1488_v27, %v1445_v26  ;;  %v1868_v38 = vmul.f32 -1.442695, %v1528_v19  ;;  %v1530_v41 = vadd.f32 %v1529_v30, %v1447_v39 }
 0xac4   :  { %v1490_v5 = vpop.f32.mrf.mxu1  ;;  %v1531_v35 = vpop.f32.mrf.mxu0 }
 0xac5   :  { %2122 = vpow2.f32 %v1866_v9  ;;  %v1867_v28 = vmul.f32 -1.442695, %v1489_v31 }
 0xac6   :  { %v1491_v16 = vpop.f32.mrf.mxu1  ;;  %v1532_v33 = vpop.f32.mrf.mxu0 }
 0xac7   :  { %2124 = vpow2.f32 %v1867_v28 }
 0xac8   :  { %2126 = vpow2.f32 %v1868_v38 }
 0xad2   :  { %v2123_v40 = vpop.eup %2122 }
 0xad3   :  { %v1543_v42 = vadd.f32 1.0, %v2123_v40 }
 0xad4   :  { %v2125_v43 = vpop.eup %2124 }
 0xad5   :  { %2128 = vrcp.f32 %v1543_v42  ;;  %v1544_v44 = vadd.f32 1.0, %v2125_v43  ;;  %v2127_v45 = vpop.eup %2126 }
 0xad6   :  { %2130 = vtanh.f32 %v1530_v41  ;;  %v1545_v49 = vadd.f32 1.0, %v2127_v45 }
 0xad7   :  { %2132 = vrcp.f32 %v1544_v44 }
 0xad8   :  { %2134 = vrcp.f32 %v1545_v49 }
 0xae2   :  { %v2129_v46 = vpop.eup %2128 }
 0xae3   :  { %v2131_v47 = vpop.eup %2130 }
 0xae4   :  { %v2133_v48 = vpop.eup %2132  ;;  %v1554_v1 = vmul.f32 %v2131_v47, %v2129_v46 }
 0xae5   :  { %v1553_v63 = vmul.f32 %v2133_v48, %v2934_v59  ;;  %v2135_v3 = vpop.eup %2134 }
 0xae7   :  { %v1555_v2 = vadd.f32 %v1554_v1, %v1553_v63 }
 0xae9   :  { %2136 = vtanh.f32 %v1555_v2 }
 0xaf6   :  { %v2137_v4 = vpop.eup %2136 }
 0xaf7   :  { %v1557_v25 = vmul.f32 %v2137_v4, %v2135_v3 }
 0xaf9   :  { %v1559_v12 = vpack.c.bf16 %v1557_v25, %v1557_v25 }
 0xafb   :  { %1614 = vmatmul.mubr.bf16.vlgmr.msra.gmra.mxu1 %v1559_v12  ;;  %1655 = vmatmul.mubr.bf16.vlgmr.msra.gmra.mxu0 %v1559_v12 }
 0xafc   :  { %1905 = vmatprep.mubr.msk.bf16.mxu1 %vm2209_vm0, %v2208_v0  ;;  %1898 = vmatpush3.bf16.msra.mxu1 %v2006_v14 }
 0xafd   :  { %1899 = vmatprep.subr.bf16.mxu1 %v2208_v0 }
 0xb00   :  { %1900 = vmatpush3.bf16.msra.mxu1 %v2007_v18 }
 0xb01   :  { %1901 = vmatprep.subr.bf16.mxu1 %v2208_v0 }
 0xb04   :  { %1902 = vmatpush3.bf16.msra.mxu1 %v2008_v20 }
 0xb05   :  { %1903 = vmatprep.subr.bf16.mxu1 %v2208_v0 }
 0xb08   :  { %1904 = vmatpush3.bf16.msra.mxu1 %v2009_v22 }
 0xbbb   :  { %v1615_v53 = vpop.f32.mrf.mxu1  ;;  %v1656_v36 = vpop.f32.mrf.mxu0 }
 0xbbc   :  { %v1616_v37 = vadd.f32 %v1615_v53, %v1564_v51  ;;  %v1657_v62 = vadd.f32 %v1656_v36, %v1572_v7 }
 0xbbd   :  { %v1617_v55 = vpop.f32.mrf.mxu1  ;;  %v1658_v56 = vpop.f32.mrf.mxu0 }
 0xbbe   :  { %v1870_v57 = vmul.f32 -1.442695, %v1616_v37  ;;  %v1618_v54 = vadd.f32 %v1617_v55, %v1568_v52  ;;  %v1872_v32 = vmul.f32 -1.442695, %v1657_v62  ;;  %v1659_v24 = vadd.f32 %v1658_v56, %v1576_v10 }
 0xbbf   :  { %v1619_v59 = vpop.f32.mrf.mxu1  ;;  %v1660_v0 = vpop.f32.mrf.mxu0 }
 0xbc0   :  { %2138 = vpow2.f32 %v1870_v57  ;;  %v1871_v58 = vmul.f32 -1.442695, %v1618_v54 }
 0xbc1   :  { %v1620_v60 = vpop.f32.mrf.mxu1  ;;  %v1661_v61 = vpop.f32.mrf.mxu0 }
 0xbc2   :  { %2140 = vpow2.f32 %v1871_v58 }
 0xbc3   :  { %2142 = vpow2.f32 %v1872_v32 }
 0xbcd   :  { %v2139_v13 = vpop.eup %2138 }
 0xbce   :  { %v1672_v29 = vadd.f32 1.0, %v2139_v13 }
 0xbcf   :  { %v2141_v15 = vpop.eup %2140 }
 0xbd0   :  { %2144 = vrcp.f32 %v1672_v29  ;;  %v1673_v23 = vadd.f32 1.0, %v2141_v15  ;;  %v2143_v26 = vpop.eup %2142 }
 0xbd1   :  { %2146 = vtanh.f32 %v1659_v24  ;;  %v1674_v31 = vadd.f32 1.0, %v2143_v26 }
 0xbd2   :  { %2148 = vrcp.f32 %v1673_v23 }
 0xbd3   :  { %2150 = vrcp.f32 %v1674_v31 }
 0xbdd   :  { %v2145_v27 = vpop.eup %2144 }
 0xbde   :  { %v2147_v30 = vpop.eup %2146 }
 0xbdf   :  { %v2149_v9 = vpop.eup %2148  ;;  %v1683_v5 = vmul.f32 %v2147_v30, %v2145_v27 }
 0xbe0   :  { %v1682_v8 = vmul.f32 %v2149_v9, %v1555_v2  ;;  %v2151_v6 = vpop.eup %2150 }
 0xbe2   :  { %v1684_v35 = vadd.f32 %v1683_v5, %v1682_v8 }
 0xbe4   :  { %2152 = vtanh.f32 %v1684_v35 }
 0xbf1   :  { %v2153_v11 = vpop.eup %2152 }
 0xbf2   :  { %v1686_v28 = vmul.f32 %v2153_v11, %v2151_v6 }
 0xbf4   :  { %v1687_v16 = vpack.c.bf16 %v1686_v28, %v1686_v28 }
 0xbf6   :  { %1697 = vrot.lane.b32.xlu1 %v1687_v16, %s2210_s16 }
 0xc68   :  { %v1698_v33 = vpop.permute.xlu1 %1697 }
 0xc69   :  { %1906 = vmatmul.mubr.msk.bf16.vlgmr.msra.gmra.mxu1 %vm384_vm5, %v1698_v33 }
 0xd29   :  { %v1760_v17 = vpop.f32.mrf.mxu1 }
 0xd2a   :  { %v1767_v19 = vadd.f32 %v1766_v34, %v1760_v17 }
 0xd2b   :  { %v1907_v21 = vpop.f32.mrf.mxu1 }
 0xd2c   :  { %1769 = vst.msk [vmem:[#allocation3] sm:$0x3] %vm1768_vm7, %v1767_v19 }
 0xd2d   :  { %v1763_v38 = vpop.f32.mrf.mxu1 }
 0xd2e   :  { %2197 = shalt.err (!%p2194_p4)
}
 0xd2f   :  { %1779 = dma.vmem_to_hbm [thread:$0]  %s1777_s21, 32, %s3010_s3, [#allocation4]   ;;  %v1908_v39 = vpop.f32.mrf.mxu1 }
 0xd30   :  { %2206 = dma.done.wait [#allocation4], 32  }
 0xd31   :  { %2207 = vsyncadd [#allocation4], 4294967264 }
 0xd32   :  { %1783 = vsyncpa [#allocation4], 1 }

</bundles_post_ra>
